<compile_context>
chip_gen: v7x
topology: tpu7x:2x2x1
jax: 0.10.0
libtpu: 0.0.40
codegen_flags: <defaults>
</compile_context>

<pallas_src>
import math

import jax
import jax.numpy as jnp
import numpy as np
from jax.experimental import pallas as pl
from jax.experimental.pallas import tpu as pltpu


# ----------------------------------------------------------------------------- kernel
def make_lstm1_kernel(num_layers: int, hidden_size: int, seq_len: int, batch: int):
    H = hidden_size
    B = batch
    T = seq_len

    def kernel(*refs):
        # ---- unpack refs -----------------------------------------------------
        x_ref = refs[0]                                   # (T*B, I)   time-major, flattened
        layer_refs = refs[1:1 + 3 * num_layers]           # per layer: w_ih (I_l,4H), w_hh (H,4H), b (1,4H)
        fc1_w_ref, fc1_b_ref, fc_w_ref, fc_b_ref = refs[1 + 3 * num_layers:5 + 3 * num_layers]
        out_ref = refs[5 + 3 * num_layers]                # (num_layers*B, num_classes)
        seq_ref, hn_ref = refs[6 + 3 * num_layers:]       # scratch: (T*B, H), (num_layers*B, H)

        for l in range(num_layers):
            w_ih = layer_refs[3 * l][...]                 # (I_l, 4H)
            w_hh = layer_refs[3 * l + 1][...]             # (H, 4H)
            b = layer_refs[3 * l + 2][...]                # (1, 4H) == b_ih + b_hh

            layer_in = x_ref[...] if l == 0 else seq_ref[...]   # (T*B, I_l)

            # Hoisted input projection (+ bias folded in): one matmul for all timesteps.
            x_proj = (jnp.dot(layer_in, w_ih, preferred_element_type=jnp.float32)
                      + b)                                # (T*B, 4H), gate order i,f,g,o

            # h_0 = c_0 = zeros, as in the PyTorch forward(). Carried in registers.
            h = jnp.zeros((B, H), jnp.float32)
            c = jnp.zeros((B, H), jnp.float32)

            # Fully unrolled recurrence: only the h @ W_hh matmul is on the serial path.
            for t in range(T):
                gates = (x_proj[t * B:(t + 1) * B, :]
                         + jnp.dot(h, w_hh, preferred_element_type=jnp.float32))  # (B, 4H)
                sig = jax.nn.sigmoid(gates)               # one full-width EUP push
                i_g = sig[:, 0 * H:1 * H]
                f_g = sig[:, 1 * H:2 * H]
                o_g = sig[:, 3 * H:4 * H]
                g_g = jnp.tanh(gates[:, 2 * H:3 * H])     # one EUP push
                c = f_g * c + i_g * g_g
                h = o_g * jnp.tanh(c)
                if l < num_layers - 1:
                    # Feed the next layer; store is off the serial dependence chain.
                    seq_ref[t * B:(t + 1) * B, :] = h

            # hn.view(-1, hidden_size) is layer-major: layer l occupies rows [l*B, (l+1)*B).
            hn_ref[l * B:(l + 1) * B, :] = h

        # ReLU -> fc_1 -> ReLU -> fc
        out = jnp.maximum(hn_ref[...], 0.0)
        out = jnp.dot(out, fc1_w_ref[...], preferred_element_type=jnp.float32) + fc1_b_ref[...]
        out = jnp.maximum(out, 0.0)
        out = jnp.dot(out, fc_w_ref[...], preferred_element_type=jnp.float32) + fc_b_ref[...]
        out_ref[...] = out

    return kernel


# ----------------------------------------------------------------------------- wrapper
def lstm1_forward(x, params, *, hidden_size, num_classes):
    """x: (B, T, input_size) float32 (batch-first, like the PyTorch module)."""
    B, T, I = x.shape
    num_layers = len(params["lstm"])

    # time-major & flattened: row index = t*B + b
    x_flat = jnp.transpose(x, (1, 0, 2)).reshape(T * B, I).astype(jnp.float32)

    inputs = [x_flat]
    for (w_ih, w_hh, b_ih, b_hh) in params["lstm"]:
        inputs += [w_ih.T, w_hh.T, (b_ih + b_hh).reshape(1, -1)]
    inputs += [
        params["fc1_w"].T, params["fc1_b"].reshape(1, -1),
        params["fc_w"].T, params["fc_b"].reshape(1, -1),
    ]

    kernel = make_lstm1_kernel(num_layers, hidden_size, T, B)
    vmem = pltpu.MemorySpace.VMEM
    return pl.pallas_call(
        kernel,
        out_shape=jax.ShapeDtypeStruct((num_layers * B, num_classes), jnp.float32),
        in_specs=[pl.BlockSpec(memory_space=vmem) for _ in inputs],
        out_specs=pl.BlockSpec(memory_space=vmem),
        scratch_shapes=[
            pltpu.VMEM((T * B, hidden_size), jnp.float32),            # inter-layer sequence
            pltpu.VMEM((num_layers * B, hidden_size), jnp.float32),   # hn (layer-major rows)
        ],
    )(*inputs)


# ----------------------------------------------------------------------------- params
def init_params(key, *, num_classes, input_size, hidden_size, num_layers):
    """Deterministic init mimicking PyTorch default U(-1/sqrt(fan), 1/sqrt(fan))."""
    params = {"lstm": []}
    stdv = 1.0 / math.sqrt(hidden_size)
    for l in range(num_layers):
        in_l = input_size if l == 0 else hidden_size
        key, k1, k2, k3, k4 = jax.random.split(key, 5)
        w_ih = jax.random.uniform(k1, (4 * hidden_size, in_l), jnp.float32, -stdv, stdv)
        w_hh = jax.random.uniform(k2, (4 * hidden_size, hidden_size), jnp.float32, -stdv, stdv)
        b_ih = jax.random.uniform(k3, (4 * hidden_size,), jnp.float32, -stdv, stdv)
        b_hh = jax.random.uniform(k4, (4 * hidden_size,), jnp.float32, -stdv, stdv)
        params["lstm"].append((w_ih, w_hh, b_ih, b_hh))

    key, k1, k2, k3, k4 = jax.random.split(key, 5)
    s1 = 1.0 / math.sqrt(hidden_size)
    params["fc1_w"] = jax.random.uniform(k1, (128, hidden_size), jnp.float32, -s1, s1)
    params["fc1_b"] = jax.random.uniform(k2, (128,), jnp.float32, -s1, s1)
    s2 = 1.0 / math.sqrt(128)
    params["fc_w"] = jax.random.uniform(k3, (num_classes, 128), jnp.float32, -s2, s2)
    params["fc_b"] = jax.random.uniform(k4, (num_classes,), jnp.float32, -s2, s2)
    return params


# ----------------------------------------------------------------------------- pure-JAX reference
def lstm1_reference(x, params, *, hidden_size):
    B, T, _ = x.shape
    H = hidden_size
    seq = x
    hn_list = []
    for (w_ih, w_hh, b_ih, b_hh) in params["lstm"]:
        h = jnp.zeros((B, H), jnp.float32)
        c = jnp.zeros((B, H), jnp.float32)
        outs = []
        for t in range(T):
            gates = seq[:, t, :] @ w_ih.T + h @ w_hh.T + b_ih + b_hh
            i_g = jax.nn.sigmoid(gates[:, 0 * H:1 * H])
            f_g = jax.nn.sigmoid(gates[:, 1 * H:2 * H])
            g_g = jnp.tanh(gates[:, 2 * H:3 * H])
            o_g = jax.nn.sigmoid(gates[:, 3 * H:4 * H])
            c = f_g * c + i_g * g_g
            h = o_g * jnp.tanh(c)
            outs.append(h)
        seq = jnp.stack(outs, axis=1)
        hn_list.append(h)
    hn = jnp.concatenate(hn_list, axis=0)
    out = jnp.maximum(hn, 0.0) @ params["fc1_w"].T + params["fc1_b"]
    out = jnp.maximum(out, 0.0) @ params["fc_w"].T + params["fc_b"]
    return out


# ----------------------------------------------------------------------------- main
if __name__ == "__main__":
    num_classes = 4
    input_size = 8
    hidden_size = 32
    num_layers = 2
    seq_length = 8
    batch = 2

    key = jax.random.PRNGKey(0)
    key, xk, pk = jax.random.split(key, 3)
    x = jax.random.normal(xk, (batch, seq_length, input_size), jnp.float32)
    params = init_params(pk, num_classes=num_classes, input_size=input_size,
                         hidden_size=hidden_size, num_layers=num_layers)

    out = lstm1_forward(x, params, hidden_size=hidden_size, num_classes=num_classes)
    out = jax.block_until_ready(out)

    ref = lstm1_reference(x, params, hidden_size=hidden_size)
    assert out.shape == (num_layers * batch, num_classes), out.shape
    np.testing.assert_allclose(np.asarray(out), np.asarray(ref), atol=1e-4, rtol=1e-4)

    print("KERNEL_OK")
</pallas_src>

<mosaic_0001>
module attributes {stable_mosaic.version = 11 : i64} {
  func.func @kernel(%arg0: memref<16x8xf32, #tpu.memory_space<vmem>>, %arg1: memref<8x128xf32, #tpu.memory_space<vmem>>, %arg2: memref<32x128xf32, #tpu.memory_space<vmem>>, %arg3: memref<1x128xf32, #tpu.memory_space<vmem>>, %arg4: memref<32x128xf32, #tpu.memory_space<vmem>>, %arg5: memref<32x128xf32, #tpu.memory_space<vmem>>, %arg6: memref<1x128xf32, #tpu.memory_space<vmem>>, %arg7: memref<32x128xf32, #tpu.memory_space<vmem>>, %arg8: memref<1x128xf32, #tpu.memory_space<vmem>>, %arg9: memref<128x4xf32, #tpu.memory_space<vmem>>, %arg10: memref<1x4xf32, #tpu.memory_space<vmem>>, %arg11: memref<4x4xf32, #tpu.memory_space<vmem>>, %arg12: memref<16x32xf32, #tpu.memory_space<vmem>>, %arg13: memref<4x32xf32, #tpu.memory_space<vmem>>) attributes {dimension_semantics = [], scalar_prefetch = 0 : i64, scratch_operands = 2 : i64, tpu.core_type = #tpu.core_type<tc>} {
    %c0 = arith.constant 0 : index
    %c0_0 = arith.constant 0 : index
    %0 = vector.load %arg1[%c0, %c0_0] : memref<8x128xf32, #tpu.memory_space<vmem>>, vector<8x128xf32>
    %c0_1 = arith.constant 0 : index
    %c0_2 = arith.constant 0 : index
    %1 = vector.load %arg2[%c0_1, %c0_2] : memref<32x128xf32, #tpu.memory_space<vmem>>, vector<32x128xf32>
    %c0_3 = arith.constant 0 : index
    %c0_4 = arith.constant 0 : index
    %2 = vector.load %arg3[%c0_3, %c0_4] : memref<1x128xf32, #tpu.memory_space<vmem>>, vector<1x128xf32>
    %c0_5 = arith.constant 0 : index
    %c0_6 = arith.constant 0 : index
    %3 = vector.load %arg0[%c0_5, %c0_6] : memref<16x8xf32, #tpu.memory_space<vmem>>, vector<16x8xf32>
    %cst = arith.constant dense<0.000000e+00> : vector<16x128xf32>
    %4 = tpu.matmul %3, %0, %cst {dimension_numbers = #tpu.dot_dimension_numbers<[1], [0], [0], [1], [0, 0, 1, 1], [], []>} : vector<16x8xf32>, vector<8x128xf32>, vector<16x128xf32> -> vector<16x128xf32>
    %5 = vector.broadcast %2 : vector<1x128xf32> to vector<16x128xf32>
    %6 = arith.addf %4, %5 : vector<16x128xf32>
    %cst_7 = arith.constant 0.000000e+00 : f32
    %7 = vector.broadcast %cst_7 : f32 to vector<2x32xf32>
    %cst_8 = arith.constant 0.000000e+00 : f32
    %8 = vector.broadcast %cst_8 : f32 to vector<2x32xf32>
    %9 = vector.extract_strided_slice %6 {offsets = [0, 0], sizes = [2, 128], strides = [1, 1]} : vector<16x128xf32> to vector<2x128xf32>
    %cst_9 = arith.constant dense<0.000000e+00> : vector<2x128xf32>
    %10 = tpu.matmul %7, %1, %cst_9 {dimension_numbers = #tpu.dot_dimension_numbers<[1], [0], [0], [1], [0, 0, 1, 1], [], []>} : vector<2x32xf32>, vector<32x128xf32>, vector<2x128xf32> -> vector<2x128xf32>
    %11 = arith.addf %9, %10 : vector<2x128xf32>
    %12 = arith.negf %11 : vector<2x128xf32>
    %13 = math.exp %12 : vector<2x128xf32>
    %cst_10 = arith.constant 1.000000e+00 : f32
    %14 = vector.broadcast %cst_10 : f32 to vector<2x128xf32>
    %15 = arith.addf %14, %13 : vector<2x128xf32>
    %16 = arith.divf %14, %15 : vector<2x128xf32>
    %17 = vector.extract_strided_slice %16 {offsets = [0, 0], sizes = [2, 32], strides = [1, 1]} : vector<2x128xf32> to vector<2x32xf32>
    %18 = vector.extract_strided_slice %16 {offsets = [0, 32], sizes = [2, 32], strides = [1, 1]} : vector<2x128xf32> to vector<2x32xf32>
    %19 = vector.extract_strided_slice %16 {offsets = [0, 96], sizes = [2, 32], strides = [1, 1]} : vector<2x128xf32> to vector<2x32xf32>
    %20 = vector.extract_strided_slice %11 {offsets = [0, 64], sizes = [2, 32], strides = [1, 1]} : vector<2x128xf32> to vector<2x32xf32>
    %21 = math.tanh %20 : vector<2x32xf32>
    %22 = arith.mulf %18, %8 : vector<2x32xf32>
    %23 = arith.mulf %17, %21 : vector<2x32xf32>
    %24 = arith.addf %22, %23 : vector<2x32xf32>
    %25 = math.tanh %24 : vector<2x32xf32>
    %26 = arith.mulf %19, %25 : vector<2x32xf32>
    %c0_11 = arith.constant 0 : index
    %c0_12 = arith.constant 0 : index
    %27 = vector.load %arg12[%c0_11, %c0_12] : memref<16x32xf32, #tpu.memory_space<vmem>>, vector<2x32xf32>
    tpu.vector_store %arg12[%c0_11, %c0_12], %26 {strides = array<i32>} : memref<16x32xf32, #tpu.memory_space<vmem>>, vector<2x32xf32>,
    %28 = vector.extract_strided_slice %6 {offsets = [2, 0], sizes = [2, 128], strides = [1, 1]} : vector<16x128xf32> to vector<2x128xf32>
    %cst_13 = arith.constant dense<0.000000e+00> : vector<2x128xf32>
    %29 = tpu.matmul %26, %1, %cst_13 {dimension_numbers = #tpu.dot_dimension_numbers<[1], [0], [0], [1], [0, 0, 1, 1], [], []>} : vector<2x32xf32>, vector<32x128xf32>, vector<2x128xf32> -> vector<2x128xf32>
    %30 = arith.addf %28, %29 : vector<2x128xf32>
    %31 = arith.negf %30 : vector<2x128xf32>
    %32 = math.exp %31 : vector<2x128xf32>
    %cst_14 = arith.constant 1.000000e+00 : f32
    %33 = vector.broadcast %cst_14 : f32 to vector<2x128xf32>
    %34 = arith.addf %33, %32 : vector<2x128xf32>
    %35 = arith.divf %33, %34 : vector<2x128xf32>
    %36 = vector.extract_strided_slice %35 {offsets = [0, 0], sizes = [2, 32], strides = [1, 1]} : vector<2x128xf32> to vector<2x32xf32>
    %37 = vector.extract_strided_slice %35 {offsets = [0, 32], sizes = [2, 32], strides = [1, 1]} : vector<2x128xf32> to vector<2x32xf32>
    %38 = vector.extract_strided_slice %35 {offsets = [0, 96], sizes = [2, 32], strides = [1, 1]} : vector<2x128xf32> to vector<2x32xf32>
    %39 = vector.extract_strided_slice %30 {offsets = [0, 64], sizes = [2, 32], strides = [1, 1]} : vector<2x128xf32> to vector<2x32xf32>
    %40 = math.tanh %39 : vector<2x32xf32>
    %41 = arith.mulf %37, %24 : vector<2x32xf32>
    %42 = arith.mulf %36, %40 : vector<2x32xf32>
    %43 = arith.addf %41, %42 : vector<2x32xf32>
    %44 = math.tanh %43 : vector<2x32xf32>
    %45 = arith.mulf %38, %44 : vector<2x32xf32>
    %c2 = arith.constant 2 : index
    %c0_15 = arith.constant 0 : index
    %46 = vector.load %arg12[%c2, %c0_15] : memref<16x32xf32, #tpu.memory_space<vmem>>, vector<2x32xf32>
    tpu.vector_store %arg12[%c2, %c0_15], %45 {strides = array<i32>} : memref<16x32xf32, #tpu.memory_space<vmem>>, vector<2x32xf32>,
    %47 = vector.extract_strided_slice %6 {offsets = [4, 0], sizes = [2, 128], strides = [1, 1]} : vector<16x128xf32> to vector<2x128xf32>
    %cst_16 = arith.constant dense<0.000000e+00> : vector<2x128xf32>
    %48 = tpu.matmul %45, %1, %cst_16 {dimension_numbers = #tpu.dot_dimension_numbers<[1], [0], [0], [1], [0, 0, 1, 1], [], []>} : vector<2x32xf32>, vector<32x128xf32>, vector<2x128xf32> -> vector<2x128xf32>
    %49 = arith.addf %47, %48 : vector<2x128xf32>
    %50 = arith.negf %49 : vector<2x128xf32>
    %51 = math.exp %50 : vector<2x128xf32>
    %cst_17 = arith.constant 1.000000e+00 : f32
    %52 = vector.broadcast %cst_17 : f32 to vector<2x128xf32>
    %53 = arith.addf %52, %51 : vector<2x128xf32>
    %54 = arith.divf %52, %53 : vector<2x128xf32>
    %55 = vector.extract_strided_slice %54 {offsets = [0, 0], sizes = [2, 32], strides = [1, 1]} : vector<2x128xf32> to vector<2x32xf32>
    %56 = vector.extract_strided_slice %54 {offsets = [0, 32], sizes = [2, 32], strides = [1, 1]} : vector<2x128xf32> to vector<2x32xf32>
    %57 = vector.extract_strided_slice %54 {offsets = [0, 96], sizes = [2, 32], strides = [1, 1]} : vector<2x128xf32> to vector<2x32xf32>
    %58 = vector.extract_strided_slice %49 {offsets = [0, 64], sizes = [2, 32], strides = [1, 1]} : vector<2x128xf32> to vector<2x32xf32>
    %59 = math.tanh %58 : vector<2x32xf32>
    %60 = arith.mulf %56, %43 : vector<2x32xf32>
    %61 = arith.mulf %55, %59 : vector<2x32xf32>
    %62 = arith.addf %60, %61 : vector<2x32xf32>
    %63 = math.tanh %62 : vector<2x32xf32>
    %64 = arith.mulf %57, %63 : vector<2x32xf32>
    %c4 = arith.constant 4 : index
    %c0_18 = arith.constant 0 : index
    %65 = vector.load %arg12[%c4, %c0_18] : memref<16x32xf32, #tpu.memory_space<vmem>>, vector<2x32xf32>
    tpu.vector_store %arg12[%c4, %c0_18], %64 {strides = array<i32>} : memref<16x32xf32, #tpu.memory_space<vmem>>, vector<2x32xf32>,
    %66 = vector.extract_strided_slice %6 {offsets = [6, 0], sizes = [2, 128], strides = [1, 1]} : vector<16x128xf32> to vector<2x128xf32>
    %cst_19 = arith.constant dense<0.000000e+00> : vector<2x128xf32>
    %67 = tpu.matmul %64, %1, %cst_19 {dimension_numbers = #tpu.dot_dimension_numbers<[1], [0], [0], [1], [0, 0, 1, 1], [], []>} : vector<2x32xf32>, vector<32x128xf32>, vector<2x128xf32> -> vector<2x128xf32>
    %68 = arith.addf %66, %67 : vector<2x128xf32>
    %69 = arith.negf %68 : vector<2x128xf32>
    %70 = math.exp %69 : vector<2x128xf32>
    %cst_20 = arith.constant 1.000000e+00 : f32
    %71 = vector.broadcast %cst_20 : f32 to vector<2x128xf32>
    %72 = arith.addf %71, %70 : vector<2x128xf32>
    %73 = arith.divf %71, %72 : vector<2x128xf32>
    %74 = vector.extract_strided_slice %73 {offsets = [0, 0], sizes = [2, 32], strides = [1, 1]} : vector<2x128xf32> to vector<2x32xf32>
    %75 = vector.extract_strided_slice %73 {offsets = [0, 32], sizes = [2, 32], strides = [1, 1]} : vector<2x128xf32> to vector<2x32xf32>
    %76 = vector.extract_strided_slice %73 {offsets = [0, 96], sizes = [2, 32], strides = [1, 1]} : vector<2x128xf32> to vector<2x32xf32>
    %77 = vector.extract_strided_slice %68 {offsets = [0, 64], sizes = [2, 32], strides = [1, 1]} : vector<2x128xf32> to vector<2x32xf32>
    %78 = math.tanh %77 : vector<2x32xf32>
    %79 = arith.mulf %75, %62 : vector<2x32xf32>
    %80 = arith.mulf %74, %78 : vector<2x32xf32>
    %81 = arith.addf %79, %80 : vector<2x32xf32>
    %82 = math.tanh %81 : vector<2x32xf32>
    %83 = arith.mulf %76, %82 : vector<2x32xf32>
    %c6 = arith.constant 6 : index
    %c0_21 = arith.constant 0 : index
    %84 = vector.load %arg12[%c6, %c0_21] : memref<16x32xf32, #tpu.memory_space<vmem>>, vector<2x32xf32>
    tpu.vector_store %arg12[%c6, %c0_21], %83 {strides = array<i32>} : memref<16x32xf32, #tpu.memory_space<vmem>>, vector<2x32xf32>,
    %85 = vector.extract_strided_slice %6 {offsets = [8, 0], sizes = [2, 128], strides = [1, 1]} : vector<16x128xf32> to vector<2x128xf32>
    %cst_22 = arith.constant dense<0.000000e+00> : vector<2x128xf32>
    %86 = tpu.matmul %83, %1, %cst_22 {dimension_numbers = #tpu.dot_dimension_numbers<[1], [0], [0], [1], [0, 0, 1, 1], [], []>} : vector<2x32xf32>, vector<32x128xf32>, vector<2x128xf32> -> vector<2x128xf32>
    %87 = arith.addf %85, %86 : vector<2x128xf32>
    %88 = arith.negf %87 : vector<2x128xf32>
    %89 = math.exp %88 : vector<2x128xf32>
    %cst_23 = arith.constant 1.000000e+00 : f32
    %90 = vector.broadcast %cst_23 : f32 to vector<2x128xf32>
    %91 = arith.addf %90, %89 : vector<2x128xf32>
    %92 = arith.divf %90, %91 : vector<2x128xf32>
    %93 = vector.extract_strided_slice %92 {offsets = [0, 0], sizes = [2, 32], strides = [1, 1]} : vector<2x128xf32> to vector<2x32xf32>
    %94 = vector.extract_strided_slice %92 {offsets = [0, 32], sizes = [2, 32], strides = [1, 1]} : vector<2x128xf32> to vector<2x32xf32>
    %95 = vector.extract_strided_slice %92 {offsets = [0, 96], sizes = [2, 32], strides = [1, 1]} : vector<2x128xf32> to vector<2x32xf32>
    %96 = vector.extract_strided_slice %87 {offsets = [0, 64], sizes = [2, 32], strides = [1, 1]} : vector<2x128xf32> to vector<2x32xf32>
    %97 = math.tanh %96 : vector<2x32xf32>
    %98 = arith.mulf %94, %81 : vector<2x32xf32>
    %99 = arith.mulf %93, %97 : vector<2x32xf32>
    %100 = arith.addf %98, %99 : vector<2x32xf32>
    %101 = math.tanh %100 : vector<2x32xf32>
    %102 = arith.mulf %95, %101 : vector<2x32xf32>
    %c8 = arith.constant 8 : index
    %c0_24 = arith.constant 0 : index
    %103 = vector.load %arg12[%c8, %c0_24] : memref<16x32xf32, #tpu.memory_space<vmem>>, vector<2x32xf32>
    tpu.vector_store %arg12[%c8, %c0_24], %102 {strides = array<i32>} : memref<16x32xf32, #tpu.memory_space<vmem>>, vector<2x32xf32>,
    %104 = vector.extract_strided_slice %6 {offsets = [10, 0], sizes = [2, 128], strides = [1, 1]} : vector<16x128xf32> to vector<2x128xf32>
    %cst_25 = arith.constant dense<0.000000e+00> : vector<2x128xf32>
    %105 = tpu.matmul %102, %1, %cst_25 {dimension_numbers = #tpu.dot_dimension_numbers<[1], [0], [0], [1], [0, 0, 1, 1], [], []>} : vector<2x32xf32>, vector<32x128xf32>, vector<2x128xf32> -> vector<2x128xf32>
    %106 = arith.addf %104, %105 : vector<2x128xf32>
    %107 = arith.negf %106 : vector<2x128xf32>
    %108 = math.exp %107 : vector<2x128xf32>
    %cst_26 = arith.constant 1.000000e+00 : f32
    %109 = vector.broadcast %cst_26 : f32 to vector<2x128xf32>
    %110 = arith.addf %109, %108 : vector<2x128xf32>
    %111 = arith.divf %109, %110 : vector<2x128xf32>
    %112 = vector.extract_strided_slice %111 {offsets = [0, 0], sizes = [2, 32], strides = [1, 1]} : vector<2x128xf32> to vector<2x32xf32>
    %113 = vector.extract_strided_slice %111 {offsets = [0, 32], sizes = [2, 32], strides = [1, 1]} : vector<2x128xf32> to vector<2x32xf32>
    %114 = vector.extract_strided_slice %111 {offsets = [0, 96], sizes = [2, 32], strides = [1, 1]} : vector<2x128xf32> to vector<2x32xf32>
    %115 = vector.extract_strided_slice %106 {offsets = [0, 64], sizes = [2, 32], strides = [1, 1]} : vector<2x128xf32> to vector<2x32xf32>
    %116 = math.tanh %115 : vector<2x32xf32>
    %117 = arith.mulf %113, %100 : vector<2x32xf32>
    %118 = arith.mulf %112, %116 : vector<2x32xf32>
    %119 = arith.addf %117, %118 : vector<2x32xf32>
    %120 = math.tanh %119 : vector<2x32xf32>
    %121 = arith.mulf %114, %120 : vector<2x32xf32>
    %c10 = arith.constant 10 : index
    %c0_27 = arith.constant 0 : index
    %122 = vector.load %arg12[%c10, %c0_27] : memref<16x32xf32, #tpu.memory_space<vmem>>, vector<2x32xf32>
    tpu.vector_store %arg12[%c10, %c0_27], %121 {strides = array<i32>} : memref<16x32xf32, #tpu.memory_space<vmem>>, vector<2x32xf32>,
    %123 = vector.extract_strided_slice %6 {offsets = [12, 0], sizes = [2, 128], strides = [1, 1]} : vector<16x128xf32> to vector<2x128xf32>
    %cst_28 = arith.constant dense<0.000000e+00> : vector<2x128xf32>
    %124 = tpu.matmul %121, %1, %cst_28 {dimension_numbers = #tpu.dot_dimension_numbers<[1], [0], [0], [1], [0, 0, 1, 1], [], []>} : vector<2x32xf32>, vector<32x128xf32>, vector<2x128xf32> -> vector<2x128xf32>
    %125 = arith.addf %123, %124 : vector<2x128xf32>
    %126 = arith.negf %125 : vector<2x128xf32>
    %127 = math.exp %126 : vector<2x128xf32>
    %cst_29 = arith.constant 1.000000e+00 : f32
    %128 = vector.broadcast %cst_29 : f32 to vector<2x128xf32>
    %129 = arith.addf %128, %127 : vector<2x128xf32>
    %130 = arith.divf %128, %129 : vector<2x128xf32>
    %131 = vector.extract_strided_slice %130 {offsets = [0, 0], sizes = [2, 32], strides = [1, 1]} : vector<2x128xf32> to vector<2x32xf32>
    %132 = vector.extract_strided_slice %130 {offsets = [0, 32], sizes = [2, 32], strides = [1, 1]} : vector<2x128xf32> to vector<2x32xf32>
    %133 = vector.extract_strided_slice %130 {offsets = [0, 96], sizes = [2, 32], strides = [1, 1]} : vector<2x128xf32> to vector<2x32xf32>
    %134 = vector.extract_strided_slice %125 {offsets = [0, 64], sizes = [2, 32], strides = [1, 1]} : vector<2x128xf32> to vector<2x32xf32>
    %135 = math.tanh %134 : vector<2x32xf32>
    %136 = arith.mulf %132, %119 : vector<2x32xf32>
    %137 = arith.mulf %131, %135 : vector<2x32xf32>
    %138 = arith.addf %136, %137 : vector<2x32xf32>
    %139 = math.tanh %138 : vector<2x32xf32>
    %140 = arith.mulf %133, %139 : vector<2x32xf32>
    %c12 = arith.constant 12 : index
    %c0_30 = arith.constant 0 : index
    %141 = vector.load %arg12[%c12, %c0_30] : memref<16x32xf32, #tpu.memory_space<vmem>>, vector<2x32xf32>
    tpu.vector_store %arg12[%c12, %c0_30], %140 {strides = array<i32>} : memref<16x32xf32, #tpu.memory_space<vmem>>, vector<2x32xf32>,
    %142 = vector.extract_strided_slice %6 {offsets = [14, 0], sizes = [2, 128], strides = [1, 1]} : vector<16x128xf32> to vector<2x128xf32>
    %cst_31 = arith.constant dense<0.000000e+00> : vector<2x128xf32>
    %143 = tpu.matmul %140, %1, %cst_31 {dimension_numbers = #tpu.dot_dimension_numbers<[1], [0], [0], [1], [0, 0, 1, 1], [], []>} : vector<2x32xf32>, vector<32x128xf32>, vector<2x128xf32> -> vector<2x128xf32>
    %144 = arith.addf %142, %143 : vector<2x128xf32>
    %145 = arith.negf %144 : vector<2x128xf32>
    %146 = math.exp %145 : vector<2x128xf32>
    %cst_32 = arith.constant 1.000000e+00 : f32
    %147 = vector.broadcast %cst_32 : f32 to vector<2x128xf32>
    %148 = arith.addf %147, %146 : vector<2x128xf32>
    %149 = arith.divf %147, %148 : vector<2x128xf32>
    %150 = vector.extract_strided_slice %149 {offsets = [0, 0], sizes = [2, 32], strides = [1, 1]} : vector<2x128xf32> to vector<2x32xf32>
    %151 = vector.extract_strided_slice %149 {offsets = [0, 32], sizes = [2, 32], strides = [1, 1]} : vector<2x128xf32> to vector<2x32xf32>
    %152 = vector.extract_strided_slice %149 {offsets = [0, 96], sizes = [2, 32], strides = [1, 1]} : vector<2x128xf32> to vector<2x32xf32>
    %153 = vector.extract_strided_slice %144 {offsets = [0, 64], sizes = [2, 32], strides = [1, 1]} : vector<2x128xf32> to vector<2x32xf32>
    %154 = math.tanh %153 : vector<2x32xf32>
    %155 = arith.mulf %151, %138 : vector<2x32xf32>
    %156 = arith.mulf %150, %154 : vector<2x32xf32>
    %157 = arith.addf %155, %156 : vector<2x32xf32>
    %158 = math.tanh %157 : vector<2x32xf32>
    %159 = arith.mulf %152, %158 : vector<2x32xf32>
    %c14 = arith.constant 14 : index
    %c0_33 = arith.constant 0 : index
    %160 = vector.load %arg12[%c14, %c0_33] : memref<16x32xf32, #tpu.memory_space<vmem>>, vector<2x32xf32>
    tpu.vector_store %arg12[%c14, %c0_33], %159 {strides = array<i32>} : memref<16x32xf32, #tpu.memory_space<vmem>>, vector<2x32xf32>,
    %c0_34 = arith.constant 0 : index
    %c0_35 = arith.constant 0 : index
    %161 = vector.load %arg13[%c0_34, %c0_35] : memref<4x32xf32, #tpu.memory_space<vmem>>, vector<2x32xf32>
    tpu.vector_store %arg13[%c0_34, %c0_35], %159 {strides = array<i32>} : memref<4x32xf32, #tpu.memory_space<vmem>>, vector<2x32xf32>,
    %c0_36 = arith.constant 0 : index
    %c0_37 = arith.constant 0 : index
    %162 = vector.load %arg4[%c0_36, %c0_37] : memref<32x128xf32, #tpu.memory_space<vmem>>, vector<32x128xf32>
    %c0_38 = arith.constant 0 : index
    %c0_39 = arith.constant 0 : index
    %163 = vector.load %arg5[%c0_38, %c0_39] : memref<32x128xf32, #tpu.memory_space<vmem>>, vector<32x128xf32>
    %c0_40 = arith.constant 0 : index
    %c0_41 = arith.constant 0 : index
    %164 = vector.load %arg6[%c0_40, %c0_41] : memref<1x128xf32, #tpu.memory_space<vmem>>, vector<1x128xf32>
    %c0_42 = arith.constant 0 : index
    %c0_43 = arith.constant 0 : index
    %165 = vector.load %arg12[%c0_42, %c0_43] : memref<16x32xf32, #tpu.memory_space<vmem>>, vector<16x32xf32>
    %cst_44 = arith.constant dense<0.000000e+00> : vector<16x128xf32>
    %166 = tpu.matmul %165, %162, %cst_44 {dimension_numbers = #tpu.dot_dimension_numbers<[1], [0], [0], [1], [0, 0, 1, 1], [], []>} : vector<16x32xf32>, vector<32x128xf32>, vector<16x128xf32> -> vector<16x128xf32>
    %167 = vector.broadcast %164 : vector<1x128xf32> to vector<16x128xf32>
    %168 = arith.addf %166, %167 : vector<16x128xf32>
    %cst_45 = arith.constant 0.000000e+00 : f32
    %169 = vector.broadcast %cst_45 : f32 to vector<2x32xf32>
    %cst_46 = arith.constant 0.000000e+00 : f32
    %170 = vector.broadcast %cst_46 : f32 to vector<2x32xf32>
    %171 = vector.extract_strided_slice %168 {offsets = [0, 0], sizes = [2, 128], strides = [1, 1]} : vector<16x128xf32> to vector<2x128xf32>
    %cst_47 = arith.constant dense<0.000000e+00> : vector<2x128xf32>
    %172 = tpu.matmul %169, %163, %cst_47 {dimension_numbers = #tpu.dot_dimension_numbers<[1], [0], [0], [1], [0, 0, 1, 1], [], []>} : vector<2x32xf32>, vector<32x128xf32>, vector<2x128xf32> -> vector<2x128xf32>
    %173 = arith.addf %171, %172 : vector<2x128xf32>
    %174 = arith.negf %173 : vector<2x128xf32>
    %175 = math.exp %174 : vector<2x128xf32>
    %cst_48 = arith.constant 1.000000e+00 : f32
    %176 = vector.broadcast %cst_48 : f32 to vector<2x128xf32>
    %177 = arith.addf %176, %175 : vector<2x128xf32>
    %178 = arith.divf %176, %177 : vector<2x128xf32>
    %179 = vector.extract_strided_slice %178 {offsets = [0, 0], sizes = [2, 32], strides = [1, 1]} : vector<2x128xf32> to vector<2x32xf32>
    %180 = vector.extract_strided_slice %178 {offsets = [0, 32], sizes = [2, 32], strides = [1, 1]} : vector<2x128xf32> to vector<2x32xf32>
    %181 = vector.extract_strided_slice %178 {offsets = [0, 96], sizes = [2, 32], strides = [1, 1]} : vector<2x128xf32> to vector<2x32xf32>
    %182 = vector.extract_strided_slice %173 {offsets = [0, 64], sizes = [2, 32], strides = [1, 1]} : vector<2x128xf32> to vector<2x32xf32>
    %183 = math.tanh %182 : vector<2x32xf32>
    %184 = arith.mulf %180, %170 : vector<2x32xf32>
    %185 = arith.mulf %179, %183 : vector<2x32xf32>
    %186 = arith.addf %184, %185 : vector<2x32xf32>
    %187 = math.tanh %186 : vector<2x32xf32>
    %188 = arith.mulf %181, %187 : vector<2x32xf32>
    %189 = vector.extract_strided_slice %168 {offsets = [2, 0], sizes = [2, 128], strides = [1, 1]} : vector<16x128xf32> to vector<2x128xf32>
    %cst_49 = arith.constant dense<0.000000e+00> : vector<2x128xf32>
    %190 = tpu.matmul %188, %163, %cst_49 {dimension_numbers = #tpu.dot_dimension_numbers<[1], [0], [0], [1], [0, 0, 1, 1], [], []>} : vector<2x32xf32>, vector<32x128xf32>, vector<2x128xf32> -> vector<2x128xf32>
    %191 = arith.addf %189, %190 : vector<2x128xf32>
    %192 = arith.negf %191 : vector<2x128xf32>
    %193 = math.exp %192 : vector<2x128xf32>
    %cst_50 = arith.constant 1.000000e+00 : f32
    %194 = vector.broadcast %cst_50 : f32 to vector<2x128xf32>
    %195 = arith.addf %194, %193 : vector<2x128xf32>
    %196 = arith.divf %194, %195 : vector<2x128xf32>
    %197 = vector.extract_strided_slice %196 {offsets = [0, 0], sizes = [2, 32], strides = [1, 1]} : vector<2x128xf32> to vector<2x32xf32>
    %198 = vector.extract_strided_slice %196 {offsets = [0, 32], sizes = [2, 32], strides = [1, 1]} : vector<2x128xf32> to vector<2x32xf32>
    %199 = vector.extract_strided_slice %196 {offsets = [0, 96], sizes = [2, 32], strides = [1, 1]} : vector<2x128xf32> to vector<2x32xf32>
    %200 = vector.extract_strided_slice %191 {offsets = [0, 64], sizes = [2, 32], strides = [1, 1]} : vector<2x128xf32> to vector<2x32xf32>
    %201 = math.tanh %200 : vector<2x32xf32>
    %202 = arith.mulf %198, %186 : vector<2x32xf32>
    %203 = arith.mulf %197, %201 : vector<2x32xf32>
    %204 = arith.addf %202, %203 : vector<2x32xf32>
    %205 = math.tanh %204 : vector<2x32xf32>
    %206 = arith.mulf %199, %205 : vector<2x32xf32>
    %207 = vector.extract_strided_slice %168 {offsets = [4, 0], sizes = [2, 128], strides = [1, 1]} : vector<16x128xf32> to vector<2x128xf32>
    %cst_51 = arith.constant dense<0.000000e+00> : vector<2x128xf32>
    %208 = tpu.matmul %206, %163, %cst_51 {dimension_numbers = #tpu.dot_dimension_numbers<[1], [0], [0], [1], [0, 0, 1, 1], [], []>} : vector<2x32xf32>, vector<32x128xf32>, vector<2x128xf32> -> vector<2x128xf32>
    %209 = arith.addf %207, %208 : vector<2x128xf32>
    %210 = arith.negf %209 : vector<2x128xf32>
    %211 = math.exp %210 : vector<2x128xf32>
    %cst_52 = arith.constant 1.000000e+00 : f32
    %212 = vector.broadcast %cst_52 : f32 to vector<2x128xf32>
    %213 = arith.addf %212, %211 : vector<2x128xf32>
    %214 = arith.divf %212, %213 : vector<2x128xf32>
    %215 = vector.extract_strided_slice %214 {offsets = [0, 0], sizes = [2, 32], strides = [1, 1]} : vector<2x128xf32> to vector<2x32xf32>
    %216 = vector.extract_strided_slice %214 {offsets = [0, 32], sizes = [2, 32], strides = [1, 1]} : vector<2x128xf32> to vector<2x32xf32>
    %217 = vector.extract_strided_slice %214 {offsets = [0, 96], sizes = [2, 32], strides = [1, 1]} : vector<2x128xf32> to vector<2x32xf32>
    %218 = vector.extract_strided_slice %209 {offsets = [0, 64], sizes = [2, 32], strides = [1, 1]} : vector<2x128xf32> to vector<2x32xf32>
    %219 = math.tanh %218 : vector<2x32xf32>
    %220 = arith.mulf %216, %204 : vector<2x32xf32>
    %221 = arith.mulf %215, %219 : vector<2x32xf32>
    %222 = arith.addf %220, %221 : vector<2x32xf32>
    %223 = math.tanh %222 : vector<2x32xf32>
    %224 = arith.mulf %217, %223 : vector<2x32xf32>
    %225 = vector.extract_strided_slice %168 {offsets = [6, 0], sizes = [2, 128], strides = [1, 1]} : vector<16x128xf32> to vector<2x128xf32>
    %cst_53 = arith.constant dense<0.000000e+00> : vector<2x128xf32>
    %226 = tpu.matmul %224, %163, %cst_53 {dimension_numbers = #tpu.dot_dimension_numbers<[1], [0], [0], [1], [0, 0, 1, 1], [], []>} : vector<2x32xf32>, vector<32x128xf32>, vector<2x128xf32> -> vector<2x128xf32>
    %227 = arith.addf %225, %226 : vector<2x128xf32>
    %228 = arith.negf %227 : vector<2x128xf32>
    %229 = math.exp %228 : vector<2x128xf32>
    %cst_54 = arith.constant 1.000000e+00 : f32
    %230 = vector.broadcast %cst_54 : f32 to vector<2x128xf32>
    %231 = arith.addf %230, %229 : vector<2x128xf32>
    %232 = arith.divf %230, %231 : vector<2x128xf32>
    %233 = vector.extract_strided_slice %232 {offsets = [0, 0], sizes = [2, 32], strides = [1, 1]} : vector<2x128xf32> to vector<2x32xf32>
    %234 = vector.extract_strided_slice %232 {offsets = [0, 32], sizes = [2, 32], strides = [1, 1]} : vector<2x128xf32> to vector<2x32xf32>
    %235 = vector.extract_strided_slice %232 {offsets = [0, 96], sizes = [2, 32], strides = [1, 1]} : vector<2x128xf32> to vector<2x32xf32>
    %236 = vector.extract_strided_slice %227 {offsets = [0, 64], sizes = [2, 32], strides = [1, 1]} : vector<2x128xf32> to vector<2x32xf32>
    %237 = math.tanh %236 : vector<2x32xf32>
    %238 = arith.mulf %234, %222 : vector<2x32xf32>
    %239 = arith.mulf %233, %237 : vector<2x32xf32>
    %240 = arith.addf %238, %239 : vector<2x32xf32>
    %241 = math.tanh %240 : vector<2x32xf32>
    %242 = arith.mulf %235, %241 : vector<2x32xf32>
    %243 = vector.extract_strided_slice %168 {offsets = [8, 0], sizes = [2, 128], strides = [1, 1]} : vector<16x128xf32> to vector<2x128xf32>
    %cst_55 = arith.constant dense<0.000000e+00> : vector<2x128xf32>
    %244 = tpu.matmul %242, %163, %cst_55 {dimension_numbers = #tpu.dot_dimension_numbers<[1], [0], [0], [1], [0, 0, 1, 1], [], []>} : vector<2x32xf32>, vector<32x128xf32>, vector<2x128xf32> -> vector<2x128xf32>
    %245 = arith.addf %243, %244 : vector<2x128xf32>
    %246 = arith.negf %245 : vector<2x128xf32>
    %247 = math.exp %246 : vector<2x128xf32>
    %cst_56 = arith.constant 1.000000e+00 : f32
    %248 = vector.broadcast %cst_56 : f32 to vector<2x128xf32>
    %249 = arith.addf %248, %247 : vector<2x128xf32>
    %250 = arith.divf %248, %249 : vector<2x128xf32>
    %251 = vector.extract_strided_slice %250 {offsets = [0, 0], sizes = [2, 32], strides = [1, 1]} : vector<2x128xf32> to vector<2x32xf32>
    %252 = vector.extract_strided_slice %250 {offsets = [0, 32], sizes = [2, 32], strides = [1, 1]} : vector<2x128xf32> to vector<2x32xf32>
    %253 = vector.extract_strided_slice %250 {offsets = [0, 96], sizes = [2, 32], strides = [1, 1]} : vector<2x128xf32> to vector<2x32xf32>
    %254 = vector.extract_strided_slice %245 {offsets = [0, 64], sizes = [2, 32], strides = [1, 1]} : vector<2x128xf32> to vector<2x32xf32>
    %255 = math.tanh %254 : vector<2x32xf32>
    %256 = arith.mulf %252, %240 : vector<2x32xf32>
    %257 = arith.mulf %251, %255 : vector<2x32xf32>
    %258 = arith.addf %256, %257 : vector<2x32xf32>
    %259 = math.tanh %258 : vector<2x32xf32>
    %260 = arith.mulf %253, %259 : vector<2x32xf32>
    %261 = vector.extract_strided_slice %168 {offsets = [10, 0], sizes = [2, 128], strides = [1, 1]} : vector<16x128xf32> to vector<2x128xf32>
    %cst_57 = arith.constant dense<0.000000e+00> : vector<2x128xf32>
    %262 = tpu.matmul %260, %163, %cst_57 {dimension_numbers = #tpu.dot_dimension_numbers<[1], [0], [0], [1], [0, 0, 1, 1], [], []>} : vector<2x32xf32>, vector<32x128xf32>, vector<2x128xf32> -> vector<2x128xf32>
    %263 = arith.addf %261, %262 : vector<2x128xf32>
    %264 = arith.negf %263 : vector<2x128xf32>
    %265 = math.exp %264 : vector<2x128xf32>
    %cst_58 = arith.constant 1.000000e+00 : f32
    %266 = vector.broadcast %cst_58 : f32 to vector<2x128xf32>
    %267 = arith.addf %266, %265 : vector<2x128xf32>
    %268 = arith.divf %266, %267 : vector<2x128xf32>
    %269 = vector.extract_strided_slice %268 {offsets = [0, 0], sizes = [2, 32], strides = [1, 1]} : vector<2x128xf32> to vector<2x32xf32>
    %270 = vector.extract_strided_slice %268 {offsets = [0, 32], sizes = [2, 32], strides = [1, 1]} : vector<2x128xf32> to vector<2x32xf32>
    %271 = vector.extract_strided_slice %268 {offsets = [0, 96], sizes = [2, 32], strides = [1, 1]} : vector<2x128xf32> to vector<2x32xf32>
    %272 = vector.extract_strided_slice %263 {offsets = [0, 64], sizes = [2, 32], strides = [1, 1]} : vector<2x128xf32> to vector<2x32xf32>
    %273 = math.tanh %272 : vector<2x32xf32>
    %274 = arith.mulf %270, %258 : vector<2x32xf32>
    %275 = arith.mulf %269, %273 : vector<2x32xf32>
    %276 = arith.addf %274, %275 : vector<2x32xf32>
    %277 = math.tanh %276 : vector<2x32xf32>
    %278 = arith.mulf %271, %277 : vector<2x32xf32>
    %279 = vector.extract_strided_slice %168 {offsets = [12, 0], sizes = [2, 128], strides = [1, 1]} : vector<16x128xf32> to vector<2x128xf32>
    %cst_59 = arith.constant dense<0.000000e+00> : vector<2x128xf32>
    %280 = tpu.matmul %278, %163, %cst_59 {dimension_numbers = #tpu.dot_dimension_numbers<[1], [0], [0], [1], [0, 0, 1, 1], [], []>} : vector<2x32xf32>, vector<32x128xf32>, vector<2x128xf32> -> vector<2x128xf32>
    %281 = arith.addf %279, %280 : vector<2x128xf32>
    %282 = arith.negf %281 : vector<2x128xf32>
    %283 = math.exp %282 : vector<2x128xf32>
    %cst_60 = arith.constant 1.000000e+00 : f32
    %284 = vector.broadcast %cst_60 : f32 to vector<2x128xf32>
    %285 = arith.addf %284, %283 : vector<2x128xf32>
    %286 = arith.divf %284, %285 : vector<2x128xf32>
    %287 = vector.extract_strided_slice %286 {offsets = [0, 0], sizes = [2, 32], strides = [1, 1]} : vector<2x128xf32> to vector<2x32xf32>
    %288 = vector.extract_strided_slice %286 {offsets = [0, 32], sizes = [2, 32], strides = [1, 1]} : vector<2x128xf32> to vector<2x32xf32>
    %289 = vector.extract_strided_slice %286 {offsets = [0, 96], sizes = [2, 32], strides = [1, 1]} : vector<2x128xf32> to vector<2x32xf32>
    %290 = vector.extract_strided_slice %281 {offsets = [0, 64], sizes = [2, 32], strides = [1, 1]} : vector<2x128xf32> to vector<2x32xf32>
    %291 = math.tanh %290 : vector<2x32xf32>
    %292 = arith.mulf %288, %276 : vector<2x32xf32>
    %293 = arith.mulf %287, %291 : vector<2x32xf32>
    %294 = arith.addf %292, %293 : vector<2x32xf32>
    %295 = math.tanh %294 : vector<2x32xf32>
    %296 = arith.mulf %289, %295 : vector<2x32xf32>
    %297 = vector.extract_strided_slice %168 {offsets = [14, 0], sizes = [2, 128], strides = [1, 1]} : vector<16x128xf32> to vector<2x128xf32>
    %cst_61 = arith.constant dense<0.000000e+00> : vector<2x128xf32>
    %298 = tpu.matmul %296, %163, %cst_61 {dimension_numbers = #tpu.dot_dimension_numbers<[1], [0], [0], [1], [0, 0, 1, 1], [], []>} : vector<2x32xf32>, vector<32x128xf32>, vector<2x128xf32> -> vector<2x128xf32>
    %299 = arith.addf %297, %298 : vector<2x128xf32>
    %300 = arith.negf %299 : vector<2x128xf32>
    %301 = math.exp %300 : vector<2x128xf32>
    %cst_62 = arith.constant 1.000000e+00 : f32
    %302 = vector.broadcast %cst_62 : f32 to vector<2x128xf32>
    %303 = arith.addf %302, %301 : vector<2x128xf32>
    %304 = arith.divf %302, %303 : vector<2x128xf32>
    %305 = vector.extract_strided_slice %304 {offsets = [0, 0], sizes = [2, 32], strides = [1, 1]} : vector<2x128xf32> to vector<2x32xf32>
    %306 = vector.extract_strided_slice %304 {offsets = [0, 32], sizes = [2, 32], strides = [1, 1]} : vector<2x128xf32> to vector<2x32xf32>
    %307 = vector.extract_strided_slice %304 {offsets = [0, 96], sizes = [2, 32], strides = [1, 1]} : vector<2x128xf32> to vector<2x32xf32>
    %308 = vector.extract_strided_slice %299 {offsets = [0, 64], sizes = [2, 32], strides = [1, 1]} : vector<2x128xf32> to vector<2x32xf32>
    %309 = math.tanh %308 : vector<2x32xf32>
    %310 = arith.mulf %306, %294 : vector<2x32xf32>
    %311 = arith.mulf %305, %309 : vector<2x32xf32>
    %312 = arith.addf %310, %311 : vector<2x32xf32>
    %313 = math.tanh %312 : vector<2x32xf32>
    %314 = arith.mulf %307, %313 : vector<2x32xf32>
    %c2_63 = arith.constant 2 : index
    %c0_64 = arith.constant 0 : index
    %315 = vector.load %arg13[%c2_63, %c0_64] : memref<4x32xf32, #tpu.memory_space<vmem>>, vector<2x32xf32>
    tpu.vector_store %arg13[%c2_63, %c0_64], %314 {strides = array<i32>} : memref<4x32xf32, #tpu.memory_space<vmem>>, vector<2x32xf32>,
    %c0_65 = arith.constant 0 : index
    %c0_66 = arith.constant 0 : index
    %316 = vector.load %arg13[%c0_65, %c0_66] : memref<4x32xf32, #tpu.memory_space<vmem>>, vector<4x32xf32>
    %cst_67 = arith.constant 0.000000e+00 : f32
    %317 = vector.broadcast %cst_67 : f32 to vector<4x32xf32>
    %318 = arith.maximumf %316, %317 : vector<4x32xf32>
    %c0_68 = arith.constant 0 : index
    %c0_69 = arith.constant 0 : index
    %319 = vector.load %arg7[%c0_68, %c0_69] : memref<32x128xf32, #tpu.memory_space<vmem>>, vector<32x128xf32>
    %cst_70 = arith.constant dense<0.000000e+00> : vector<4x128xf32>
    %320 = tpu.matmul %318, %319, %cst_70 {dimension_numbers = #tpu.dot_dimension_numbers<[1], [0], [0], [1], [0, 0, 1, 1], [], []>} : vector<4x32xf32>, vector<32x128xf32>, vector<4x128xf32> -> vector<4x128xf32>
    %c0_71 = arith.constant 0 : index
    %c0_72 = arith.constant 0 : index
    %321 = vector.load %arg8[%c0_71, %c0_72] : memref<1x128xf32, #tpu.memory_space<vmem>>, vector<1x128xf32>
    %322 = vector.broadcast %321 : vector<1x128xf32> to vector<4x128xf32>
    %323 = arith.addf %320, %322 : vector<4x128xf32>
    %cst_73 = arith.constant 0.000000e+00 : f32
    %324 = vector.broadcast %cst_73 : f32 to vector<4x128xf32>
    %325 = arith.maximumf %323, %324 : vector<4x128xf32>
    %c0_74 = arith.constant 0 : index
    %c0_75 = arith.constant 0 : index
    %326 = vector.load %arg9[%c0_74, %c0_75] : memref<128x4xf32, #tpu.memory_space<vmem>>, vector<128x4xf32>
    %cst_76 = arith.constant dense<0.000000e+00> : vector<4x4xf32>
    %327 = tpu.matmul %325, %326, %cst_76 {dimension_numbers = #tpu.dot_dimension_numbers<[1], [0], [0], [1], [0, 0, 1, 1], [], []>} : vector<4x128xf32>, vector<128x4xf32>, vector<4x4xf32> -> vector<4x4xf32>
    %c0_77 = arith.constant 0 : index
    %c0_78 = arith.constant 0 : index
    %328 = vector.load %arg10[%c0_77, %c0_78] : memref<1x4xf32, #tpu.memory_space<vmem>>, vector<1x4xf32>
    %329 = vector.broadcast %328 : vector<1x4xf32> to vector<4x4xf32>
    %330 = arith.addf %327, %329 : vector<4x4xf32>
    %c0_79 = arith.constant 0 : index
    %c0_80 = arith.constant 0 : index
    %331 = vector.load %arg11[%c0_79, %c0_80] : memref<4x4xf32, #tpu.memory_space<vmem>>, vector<4x4xf32>
    tpu.vector_store %arg11[%c0_79, %c0_80], %330 {strides = array<i32>} : memref<4x4xf32, #tpu.memory_space<vmem>>, vector<4x4xf32>,
    return
  }
}

</mosaic_0001>

<bundles_post_ra>
// kernel: tpu_custom_call.1
= control target key start
LH: loop header
LB: loop body
LE: loop exit
PB: predicated region body
PF: predicated region fallthrough
CT: control target
= control target key end

     0   :  { %vm53_vm0 = vcmask 64512   ;;  %v2830_v8 = vmov 0.0|0.0   ;;  %s3281_s0 = inlined_call_operand.vmem [shape: f32[16,8], index: 0, kind: input, shape index: {}]   ;;  %s3282_s1 = inlined_call_operand.vmem [shape: f32[8,128], index: 1, kind: input, shape index: {}]   ;;  %s3283_s2 = inlined_call_operand.vmem [shape: f32[32,128], index: 2, kind: input, shape index: {}]   ;;  %s3284_s3 = inlined_call_operand.vmem [shape: f32[1,128], index: 3, kind: input, shape index: {}]   ;;  %s3285_s4 = inlined_call_operand.vmem [shape: f32[32,128], index: 4, kind: input, shape index: {}]   ;;  %s3286_s5 = inlined_call_operand.vmem [shape: f32[32,128], index: 5, kind: input, shape index: {}]   ;;  %s3287_s6 = inlined_call_operand.vmem [shape: f32[1,128], index: 6, kind: input, shape index: {}]   ;;  %s3288_s7 = inlined_call_operand.vmem [shape: f32[32,128], index: 7, kind: input, shape index: {}]   ;;  %s3289_s8 = inlined_call_operand.vmem [shape: f32[1,128], index: 8, kind: input, shape index: {}]   ;;  %s3290_s9 = inlined_call_operand.vmem [shape: f32[128,4], index: 9, kind: input, shape index: {}]   ;;  %s3291_s10 = inlined_call_operand.vmem [shape: f32[1,4], index: 10, kind: input, shape index: {}]   ;;  %s3292_s11 = inlined_call_operand.hbm [shape: f32[4,4], index: 11, kind: output, shape index: {}]  }
   0x1   :  { %v39_v0 = vld [vmem:[%s3282_s1] sm:$0xff]  ;;  %v46_v2 = vld [vmem:[%s3281_s0 + $0x8] sm:$0xff]  ;;  %v42_v5 = vld [vmem:[%s3283_s2 + $0x10] sm:$0xff]  ;;  %2562 = vmatprep.subr.bf16.mxu1 %v2830_v8 }
   0x2   :  { %v45_v1 = vld [vmem:[%s3281_s0] sm:$0xff]  ;;  %2300 = vmatprep.subr.mxu0 %v39_v0  ;;  %v41_v4 = vld [vmem:[%s3283_s2 + $0x8] sm:$0xff]  ;;  %v43_v7 = vld [vmem:[%s3283_s2 + $0x18] sm:$0xff] }
   0x3   :  { %2302 = vmatprep.mubr.msk.f32.mxu0 %vm53_vm0, %v45_v1  ;;  %v40_v3 = vld [vmem:[%s3283_s2] sm:$0xff]  ;;  %2301 = vmatpush3.msra.mxu0 %v39_v0 }
   0x4   :  { %v2914_v6 = vpack.c.bf16 %v41_v4, %v40_v3 }
   0x5   :  { %16 = vsyncpa [#allocation5], 0  ;;  %2303 = vmatmul.mubr.msk.f32.vlgmr.msra.gmra.mrb[0].mxu0 %vm53_vm0, %v46_v2  ;;  %2538 = vmatprep.subr.bf16.mxu0 %v2830_v8  ;;  %v2922_v9 = vpack.c.bf16 %v43_v7, %v42_v5  ;;  %vm2831_vm1 = vmmov 0   ;;  %v2832_v10 = vmov 0.0   ;;  %v2150_v11 = vld [vmem:[%s3284_s3] ss:$0 sm:$0xff] }
   0x6   :  { %2540 = vmatpush3.bf16.msra.mxu0 %v2914_v6  ;;  %2313 = vmatprep.mubr.msk.f32.mxu0 %vm2831_vm1, %v2832_v10  ;;  %s2833_s30 = smov 64   ;;  %s2834_s3 = smov 32   ;;  %vm238_vm2 = vcmask 254976   ;;  %vm135_vm3 = vcmask 261120   ;;  %vm347_vm4 = vcmask 257026   ;;  %vm571_vm5 = vcmask 261126  }
   0x7   :  { %2541 = vmatprep.subr.bf16.mxu0 %v2830_v8  ;;  %2564 = vmatpush3.bf16.msra.mxu1 %v2914_v6  ;;  %vm459_vm6 = vcmask 259076   ;;  %s2835_s21 = smov [#allocation4]   ;;  %vm2134_vm7 = vcmask 27648  }
   0x8   :  { %2565 = vmatprep.subr.bf16.mxu1 %v2830_v8  ;;  %2357 = vmatprep.mubr.msk.f32.mxu1 %vm2831_vm1, %v2832_v10  ;;  %s2142_s22 = sshll.u32 %s2835_s21, 4  ;;  %s2143_s22 = int_to_ptr.vmem [resolvable:$true] %s2142_s22 }
   0x9   :  { %p2811_p1 = scmp.lt.s32.totalorder %s2143_s22, %s2143_s22 }
   0xa   :  { %2543 = vmatpush3.bf16.msra.mxu0 %v2922_v9 }
   0xb   :  { %2544 = vmatprep.subr.bf16.mxu0 %v2830_v8  ;;  %2567 = vmatpush3.bf16.msra.mxu1 %v2922_v9 }
   0xc   :  { %2574 = vmatprep.subr.bf16.mxu1 %v2830_v8 }
   0xd   :  { %2314 = vmatmul.mubr.f32.vlgmr.msra.gmra.mrb[2].mxu0 %v2832_v10 }
   0xe   :  { %2546 = vmatpush3.bf16.msra.mxu0 %v2914_v6  ;;  %2324 = vmatprep.mubr.msk.f32.mxu0 %vm2831_vm1, %v2832_v10 }
   0xf   :  { %2547 = vmatprep.subr.bf16.mxu0 %v2830_v8 }
  0x12   :  { %2549 = vmatpush3.bf16.msra.mxu0 %v2922_v9 }
  0x13   :  { %2550 = vmatprep.subr.bf16.mxu0 %v2830_v8 }
  0xd8   :  { %v2304_v12 = vpop.f32.mrb[0].mxu0 }
  0xd9   :  { %v2945_v13 = vadd.f32 %v2304_v12, %v2150_v11  ;;  %v126_v14 = vpop.f32.mrb[1].mxu0 }
  0xda   :  { %v2947_v15 = vadd.f32 %v2150_v11, %v126_v14 }
  0xe0   :  { %v205_v16 = vpop.f32.mrb[2].mxu0 }
  0xe1   :  { %v209_v17 = vadd.f32 %v205_v16, %v2947_v15  ;;  %v2315_v18 = vpop.f32.mrb[3].mxu0 }
  0xe3   :  { %2678 = vtanh.f32 %v209_v17  ;;  %v2153_v20 = vmul.f32 -1.442695, %v209_v17 }
  0xe5   :  { %2680 = vpow2.f32 %v2153_v20 }
  0xed   :  { %v2679_v19 = vpop.eup %2678 }
  0xee   :  { %219 = vrot.lane.b32.xlu0 %v2679_v19, %s2833_s30 }
  0xef   :  { %v2681_v21 = vpop.eup %2680 }
  0xf0   :  { %v213_v22 = vadd.f32 1.0, %v2681_v21 }
  0xf2   :  { %2682 = vrcp.f32 %v213_v22 }
  0xfc   :  { %v2683_v23 = vpop.eup %2682 }
  0xfd   :  { %v217_v26 = vmul.f32 0.0, %v2683_v23 }
 0x160   :  { %v220_v24 = vpop.permute.xlu0 %219 }
 0x161   :  { %v222_v25 = vmul.f32 %v2683_v23, %v220_v24 }
 0x163   :  { %224 = vrot.lane.b32.xlu0 %v222_v25, %s2834_s3 }
 0x1d5   :  { %v225_v27 = vpop.permute.xlu0 %224 }
 0x1d6   :  { %v227_v28 = vadd.f32 %v225_v27, %v217_v26 }
 0x1d8   :  { %2684 = vtanh.f32 %v227_v28  ;;  %v324_v44 = vrot.slane %v227_v28, 6 }
 0x1e2   :  { %v2685_v29 = vpop.eup %2684 }
 0x1e3   :  { %230 = vrot.lane.b32.xlu1 %v2685_v29, %s2833_s30 }
 0x255   :  { %v231_v30 = vpop.permute.xlu1 %230 }
 0x256   :  { %v233_v31 = vmul.f32 %v2683_v23, %v231_v30 }
 0x258   :  { %235 = vrot.lane.b32.xlu1 %v233_v31, %s2834_s3 }
 0x2ca   :  { %v236_v32 = vpop.permute.xlu1 %235 }
 0x2cb   :  { %239 = vst.msk [vmem:[#allocation2] sm:$0x3] %vm238_vm2, %v236_v32  ;;  %2325 = vmatmul.mubr.msk.f32.vlgmr.msra.gmra.mrb[4].mxu0 %vm135_vm3, %v236_v32 }
 0x2cc   :  { %2552 = vmatpush3.bf16.msra.mxu0 %v2914_v6  ;;  %2335 = vmatprep.mubr.msk.f32.mxu0 %vm2831_vm1, %v2832_v10 }
 0x2cd   :  { %2553 = vmatprep.subr.bf16.mxu0 %v2830_v8 }
 0x2d0   :  { %2555 = vmatpush3.bf16.msra.mxu0 %v2922_v9 }
 0x2d1   :  { %2556 = vmatprep.subr.bf16.mxu0 %v2830_v8 }
 0x39e   :  { %v308_v33 = vpop.f32.mrb[4].mxu0 }
 0x39f   :  { %v313_v34 = vrot.slane %v308_v33, 6  ;;  %v2326_v35 = vpop.f32.mrb[5].mxu0 }
 0x3a1   :  { %v315_v36 = vadd.f32 %v313_v34, %v2947_v15 }
 0x3a3   :  { %2686 = vtanh.f32 %v315_v36  ;;  %v2155_v38 = vmul.f32 -1.442695, %v315_v36 }
 0x3a5   :  { %2688 = vpow2.f32 %v2155_v38 }
 0x3ad   :  { %v2687_v37 = vpop.eup %2686 }
 0x3ae   :  { %328 = vrot.lane.b32.xlu0 %v2687_v37, %s2833_s30 }
 0x3af   :  { %v2689_v39 = vpop.eup %2688 }
 0x3b0   :  { %v319_v40 = vadd.f32 1.0, %v2689_v39 }
 0x3b2   :  { %2690 = vrcp.f32 %v319_v40 }
 0x3bc   :  { %v2691_v41 = vpop.eup %2690 }
 0x3bd   :  { %v326_v45 = vmul.f32 %v2691_v41, %v324_v44 }
 0x420   :  { %v329_v42 = vpop.permute.xlu0 %328 }
 0x421   :  { %v331_v43 = vmul.f32 %v2691_v41, %v329_v42 }
 0x423   :  { %333 = vrot.lane.b32.xlu1 %v331_v43, %s2834_s3 }
 0x495   :  { %v334_v46 = vpop.permute.xlu1 %333 }
 0x496   :  { %v336_v47 = vadd.f32 %v334_v46, %v326_v45 }
 0x498   :  { %2692 = vtanh.f32 %v336_v47  ;;  %v436_v0 = vrot.slane %v336_v47, 6 }
 0x4a2   :  { %v2693_v48 = vpop.eup %2692 }
 0x4a3   :  { %339 = vrot.lane.b32.xlu0 %v2693_v48, %s2833_s30 }
 0x515   :  { %v340_v49 = vpop.permute.xlu0 %339 }
 0x516   :  { %v2966_v50 = vmul.f32 %v2691_v41, %v340_v49 }
 0x518   :  { %v349_v51 = vrot.slane %v2966_v50, 2 }
 0x51a   :  { %350 = vrot.lane.b32.xlu1 %v349_v51, %s2834_s3 }
 0x58c   :  { %v351_v52 = vpop.permute.xlu1 %350 }
 0x58d   :  { %2336 = vmatmul.mubr.msk.f32.vlgmr.msra.gmra.mrb[6].mxu0 %vm135_vm3, %v351_v52 }
 0x58e   :  { %2558 = vmatpush3.bf16.msra.mxu0 %v2914_v6  ;;  %2346 = vmatprep.mubr.msk.f32.mxu0 %vm2831_vm1, %v2832_v10 }
 0x58f   :  { %2559 = vmatprep.subr.bf16.mxu0 %v2830_v8 }
 0x592   :  { %2561 = vmatpush3.bf16.msra.mxu0 %v2922_v9 }
 0x593   :  { %2568 = vmatprep.subr.bf16.mxu0 %v2830_v8 }
 0x660   :  { %v420_v53 = vpop.f32.mrb[6].mxu0 }
 0x661   :  { %v425_v54 = vrot.slane %v420_v53, 4  ;;  %v2337_v55 = vpop.f32.mrb[7].mxu0 }
 0x663   :  { %v427_v56 = vadd.f32 %v425_v54, %v2947_v15 }
 0x665   :  { %2694 = vtanh.f32 %v427_v56  ;;  %v2157_v58 = vmul.f32 -1.442695, %v427_v56 }
 0x667   :  { %2696 = vpow2.f32 %v2157_v58 }
 0x66f   :  { %v2695_v57 = vpop.eup %2694 }
 0x670   :  { %440 = vrot.lane.b32.xlu0 %v2695_v57, %s2833_s30 }
 0x671   :  { %v2697_v59 = vpop.eup %2696 }
 0x672   :  { %v431_v60 = vadd.f32 1.0, %v2697_v59 }
 0x674   :  { %2698 = vrcp.f32 %v431_v60 }
 0x67e   :  { %v2699_v61 = vpop.eup %2698 }
 0x67f   :  { %v438_v1 = vmul.f32 %v2699_v61, %v436_v0 }
 0x6e2   :  { %v441_v62 = vpop.permute.xlu0 %440 }
 0x6e3   :  { %v443_v63 = vmul.f32 %v2699_v61, %v441_v62 }
 0x6e5   :  { %445 = vrot.lane.b32.xlu1 %v443_v63, %s2834_s3 }
 0x757   :  { %v446_v2 = vpop.permute.xlu1 %445 }
 0x758   :  { %v448_v3 = vadd.f32 %v446_v2, %v438_v1 }
 0x75a   :  { %2700 = vtanh.f32 %v448_v3  ;;  %v548_v26 = vrot.slane %v448_v3, 6 }
 0x764   :  { %v2701_v4 = vpop.eup %2700 }
 0x765   :  { %451 = vrot.lane.b32.xlu0 %v2701_v4, %s2833_s30 }
 0x7d7   :  { %v452_v5 = vpop.permute.xlu0 %451 }
 0x7d8   :  { %v2981_v7 = vmul.f32 %v2699_v61, %v452_v5 }
 0x7da   :  { %v461_v11 = vrot.slane %v2981_v7, 4 }
 0x7dc   :  { %462 = vrot.lane.b32.xlu1 %v461_v11, %s2834_s3 }
 0x84e   :  { %v463_v12 = vpop.permute.xlu1 %462 }
 0x84f   :  { %2347 = vmatmul.mubr.msk.f32.vlgmr.msra.gmra.mrb[8].mxu0 %vm135_vm3, %v463_v12 }
 0x850   :  { %2570 = vmatpush3.bf16.msra.mxu0 %v2914_v6  ;;  %2368 = vmatprep.mubr.msk.f32.mxu0 %vm2831_vm1, %v2832_v10 }
 0x851   :  { %2571 = vmatprep.subr.bf16.mxu0 %v2830_v8 }
 0x854   :  { %2573 = vmatpush3.bf16.msra.mxu0 %v2922_v9 }
 0x855   :  { %2580 = vmatprep.subr.bf16.mxu0 %v2830_v8 }
 0x922   :  { %v532_v14 = vpop.f32.mrb[8].mxu0 }
 0x923   :  { %v537_v16 = vrot.slane %v532_v14, 2  ;;  %v2348_v17 = vpop.f32.mrb[9].mxu0 }
 0x925   :  { %v539_v18 = vadd.f32 %v537_v16, %v2947_v15 }
 0x927   :  { %2702 = vtanh.f32 %v539_v18  ;;  %v2159_v20 = vmul.f32 -1.442695, %v539_v18 }
 0x929   :  { %2704 = vpow2.f32 %v2159_v20 }
 0x931   :  { %v2703_v19 = vpop.eup %2702 }
 0x932   :  { %552 = vrot.lane.b32.xlu0 %v2703_v19, %s2833_s30 }
 0x933   :  { %v2705_v21 = vpop.eup %2704 }
 0x934   :  { %v543_v22 = vadd.f32 1.0, %v2705_v21 }
 0x936   :  { %2706 = vrcp.f32 %v543_v22 }
 0x940   :  { %v2707_v23 = vpop.eup %2706 }
 0x941   :  { %v550_v27 = vmul.f32 %v2707_v23, %v548_v26 }
 0x9a4   :  { %v553_v24 = vpop.permute.xlu0 %552 }
 0x9a5   :  { %v555_v25 = vmul.f32 %v2707_v23, %v553_v24 }
 0x9a7   :  { %557 = vrot.lane.b32.xlu1 %v555_v25, %s2834_s3 }
 0xa19   :  { %v558_v28 = vpop.permute.xlu1 %557 }
 0xa1a   :  { %v560_v29 = vadd.f32 %v558_v28, %v550_v27 }
 0xa1c   :  { %2708 = vtanh.f32 %v560_v29  ;;  %v657_v44 = vrot.slane %v560_v29, 6 }
 0xa26   :  { %v2709_v15 = vpop.eup %2708 }
 0xa27   :  { %563 = vrot.lane.b32.xlu0 %v2709_v15, %s2833_s30 }
 0xa99   :  { %v564_v30 = vpop.permute.xlu0 %563 }
 0xa9a   :  { %v2996_v31 = vmul.f32 %v2707_v23, %v564_v30 }
 0xa9c   :  { %v573_v32 = vrot.slane %v2996_v31, 6 }
 0xa9e   :  { %574 = vrot.lane.b32.xlu1 %v573_v32, %s2834_s3 }
 0xb10   :  { %v575_v33 = vpop.permute.xlu1 %574 }
 0xb11   :  { %2358 = vmatmul.mubr.msk.f32.vlgmr.msra.gmra.mrb[0].mxu1 %vm135_vm3, %v575_v33 }
 0xb12   :  { %2576 = vmatpush3.bf16.msra.mxu1 %v2914_v6  ;;  %2379 = vmatprep.mubr.msk.f32.mxu1 %vm2831_vm1, %v2832_v10 }
 0xb13   :  { %2577 = vmatprep.subr.bf16.mxu1 %v2830_v8 }
 0xb16   :  { %2579 = vmatpush3.bf16.msra.mxu1 %v2922_v9 }
 0xbe4   :  { %v644_v34 = vpop.f32.mrb[0].mxu1 }
 0xbe5   :  { %v648_v35 = vadd.f32 %v644_v34, %v2945_v13  ;;  %v2359_v36 = vpop.f32.mrb[1].mxu1 }
 0xbe7   :  { %2710 = vtanh.f32 %v648_v35  ;;  %v2161_v38 = vmul.f32 -1.442695, %v648_v35 }
 0xbe9   :  { %2712 = vpow2.f32 %v2161_v38 }
 0xbf1   :  { %v2711_v37 = vpop.eup %2710 }
 0xbf2   :  { %661 = vrot.lane.b32.xlu0 %v2711_v37, %s2833_s30 }
 0xbf3   :  { %v2713_v39 = vpop.eup %2712 }
 0xbf4   :  { %v652_v40 = vadd.f32 1.0, %v2713_v39 }
 0xbf6   :  { %2714 = vrcp.f32 %v652_v40 }
 0xc00   :  { %v2715_v41 = vpop.eup %2714 }
 0xc01   :  { %v659_v45 = vmul.f32 %v2715_v41, %v657_v44 }
 0xc64   :  { %v662_v42 = vpop.permute.xlu0 %661 }
 0xc65   :  { %v664_v43 = vmul.f32 %v2715_v41, %v662_v42 }
 0xc67   :  { %666 = vrot.lane.b32.xlu1 %v664_v43, %s2834_s3 }
 0xcd9   :  { %v667_v46 = vpop.permute.xlu1 %666 }
 0xcda   :  { %v669_v47 = vadd.f32 %v667_v46, %v659_v45 }
 0xcdc   :  { %2716 = vtanh.f32 %v669_v47 }
 0xce6   :  { %v2717_v48 = vpop.eup %2716 }
 0xce7   :  { %672 = vrot.lane.b32.xlu0 %v2717_v48, %s2833_s30 }
 0xd59   :  { %v673_v49 = vpop.permute.xlu0 %672 }
 0xd5a   :  { %v675_v51 = vmul.f32 %v2715_v41, %v673_v49 }
 0xd5c   :  { %677 = vrot.lane.b32.xlu1 %v675_v51, %s2834_s3 }
 0xdce   :  { %v678_v52 = vpop.permute.xlu1 %677 }
 0xdcf   :  { %680 = vst.msk [vmem:[#allocation2 + $0x8] sm:$0x3] %vm238_vm2, %v678_v52  ;;  %2369 = vmatmul.mubr.msk.f32.vlgmr.msra.gmra.mrb[10].mxu0 %vm135_vm3, %v678_v52  ;;  %v1013_v52 = vld [vmem:[%s3285_s4 + $0x8] sm:$0xff] }
 0xdd0   :  { %2582 = vmatpush3.bf16.msra.mxu0 %v2914_v6  ;;  %2390 = vmatprep.mubr.msk.f32.mxu0 %vm2831_vm1, %v2832_v10 }
 0xdd1   :  { %2583 = vmatprep.subr.bf16.mxu0 %v2830_v8 }
 0xdd4   :  { %2585 = vmatpush3.bf16.msra.mxu0 %v2922_v9  ;;  %v765_v9 = vrot.slane %v669_v47, 6 }
 0xdd5   :  { %2594 = vmatprep.subr.bf16.mxu0 %v2830_v8 }
 0xea2   :  { %v749_v53 = vpop.f32.mrb[10].mxu0 }
 0xea3   :  { %v754_v54 = vrot.slane %v749_v53, 6  ;;  %v2370_v55 = vpop.f32.mrb[11].mxu0 }
 0xea4   :  { %v1014_v55 = vld [vmem:[%s3285_s4 + $0x10] sm:$0xff] }
 0xea5   :  { %v756_v56 = vadd.f32 %v754_v54, %v2945_v13  ;;  %v1016_v54 = vld [vmem:[%s3286_s5] sm:$0xff] }
 0xea7   :  { %2718 = vtanh.f32 %v756_v56  ;;  %v2163_v58 = vmul.f32 -1.442695, %v756_v56 }
 0xea9   :  { %2720 = vpow2.f32 %v2163_v58  ;;  %v1018_v58 = vld [vmem:[%s3286_s5 + $0x10] sm:$0xff] }
 0xeb1   :  { %v2719_v57 = vpop.eup %2718 }
 0xeb2   :  { %769 = vrot.lane.b32.xlu0 %v2719_v57, %s2833_s30  ;;  %v1015_v57 = vld [vmem:[%s3285_s4 + $0x18] sm:$0xff] }
 0xeb3   :  { %v2721_v6 = vpop.eup %2720 }
 0xeb4   :  { %v760_v59 = vadd.f32 1.0, %v2721_v6  ;;  %v1019_v6 = vld [vmem:[%s3286_s5 + $0x18] sm:$0xff] }
 0xeb6   :  { %2722 = vrcp.f32 %v760_v59  ;;  %v2590_v59 = vpack.c.bf16 %v1015_v57, %v1014_v55 }
 0xec0   :  { %v2723_v60 = vpop.eup %2722 }
 0xec1   :  { %v767_v63 = vmul.f32 %v2723_v60, %v765_v9 }
 0xf24   :  { %v770_v61 = vpop.permute.xlu0 %769 }
 0xf25   :  { %v772_v62 = vmul.f32 %v2723_v60, %v770_v61 }
 0xf27   :  { %774 = vrot.lane.b32.xlu1 %v772_v62, %s2834_s3 }
 0xf99   :  { %v775_v0 = vpop.permute.xlu1 %774 }
 0xf9a   :  { %v777_v1 = vadd.f32 %v775_v0, %v767_v63 }
 0xf9c   :  { %2724 = vtanh.f32 %v777_v1  ;;  %v876_v25 = vrot.slane %v777_v1, 6 }
 0xfa6   :  { %v2725_v2 = vpop.eup %2724 }
 0xfa7   :  { %780 = vrot.lane.b32.xlu0 %v2725_v2, %s2833_s30 }
0x1019   :  { %v781_v3 = vpop.permute.xlu0 %780 }
0x101a   :  { %v3023_v4 = vmul.f32 %v2723_v60, %v781_v3  ;;  %v3079_v60 = vpack.c.bf16 %v1019_v6, %v1018_v58 }
0x101c   :  { %v789_v5 = vrot.slane %v3023_v4, 2 }
0x101e   :  { %790 = vrot.lane.b32.xlu1 %v789_v5, %s2834_s3  ;;  %v2168_v5 = vld [vmem:[%s3287_s6] ss:$0 sm:$0xff] }
0x1090   :  { %v791_v11 = vpop.permute.xlu1 %790 }
0x1091   :  { %2380 = vmatmul.mubr.msk.f32.vlgmr.msra.gmra.mrb[2].mxu1 %vm135_vm3, %v791_v11 }
0x1164   :  { %v860_v12 = vpop.f32.mrb[2].mxu1 }
0x1165   :  { %v865_v14 = vrot.slane %v860_v12, 4  ;;  %v2381_v16 = vpop.f32.mrb[3].mxu1 }
0x1167   :  { %v867_v17 = vadd.f32 %v865_v14, %v2945_v13 }
0x1169   :  { %2726 = vtanh.f32 %v867_v17  ;;  %v2165_v19 = vmul.f32 -1.442695, %v867_v17 }
0x116b   :  { %2728 = vpow2.f32 %v2165_v19 }
0x1173   :  { %v2727_v18 = vpop.eup %2726 }
0x1174   :  { %880 = vrot.lane.b32.xlu0 %v2727_v18, %s2833_s30 }
0x1175   :  { %v2729_v20 = vpop.eup %2728 }
0x1176   :  { %v871_v21 = vadd.f32 1.0, %v2729_v20 }
0x1178   :  { %2730 = vrcp.f32 %v871_v21 }
0x1182   :  { %v2731_v22 = vpop.eup %2730 }
0x1183   :  { %v878_v26 = vmul.f32 %v2731_v22, %v876_v25 }
0x11e6   :  { %v881_v23 = vpop.permute.xlu0 %880 }
0x11e7   :  { %v883_v24 = vmul.f32 %v2731_v22, %v881_v23 }
0x11e9   :  { %885 = vrot.lane.b32.xlu1 %v883_v24, %s2834_s3 }
0x125b   :  { %v886_v27 = vpop.permute.xlu1 %885 }
0x125c   :  { %v888_v28 = vadd.f32 %v886_v27, %v878_v26 }
0x125e   :  { %2732 = vtanh.f32 %v888_v28 }
0x1268   :  { %v2733_v29 = vpop.eup %2732 }
0x1269   :  { %891 = vrot.lane.b32.xlu0 %v2733_v29, %s2833_s30 }
0x12db   :  { %v892_v15 = vpop.permute.xlu0 %891 }
0x12dc   :  { %v894_v30 = vmul.f32 %v2731_v22, %v892_v15 }
0x12de   :  { %v900_v32 = vrot.slane %v894_v30, 4 }
0x12e0   :  { %901 = vrot.lane.b32.xlu1 %v900_v32, %s2834_s3 }
0x1352   :  { %v902_v33 = vpop.permute.xlu1 %901 }
0x1353   :  { %2391 = vmatmul.mubr.msk.f32.vlgmr.msra.gmra.mrb[12].mxu0 %vm135_vm3, %v902_v33 }
0x1354   :  { %2412 = vmatprep.mubr.msk.f32.mxu0 %vm2831_vm1, %v2832_v10 }
0x1426   :  { %v971_v34 = vpop.f32.mrb[12].mxu0 }
0x1427   :  { %v976_v35 = vrot.slane %v971_v34, 2  ;;  %v2392_v36 = vpop.f32.mrb[13].mxu0 }
0x1429   :  { %v978_v37 = vadd.f32 %v976_v35, %v2945_v13  ;;  %v987_v13 = vrot.slane %v888_v28, 6 }
0x142b   :  { %2734 = vtanh.f32 %v978_v37  ;;  %v2167_v39 = vmul.f32 -1.442695, %v978_v37 }
0x142d   :  { %2736 = vpow2.f32 %v2167_v39 }
0x1435   :  { %v2735_v38 = vpop.eup %2734 }
0x1436   :  { %991 = vrot.lane.b32.xlu0 %v2735_v38, %s2833_s30 }
0x1437   :  { %v2737_v40 = vpop.eup %2736 }
0x1438   :  { %v982_v41 = vadd.f32 1.0, %v2737_v40 }
0x143a   :  { %2738 = vrcp.f32 %v982_v41 }
0x1444   :  { %v2739_v42 = vpop.eup %2738 }
0x1445   :  { %v989_v45 = vmul.f32 %v2739_v42, %v987_v13 }
0x14a8   :  { %v992_v43 = vpop.permute.xlu0 %991 }
0x14a9   :  { %v994_v44 = vmul.f32 %v2739_v42, %v992_v43 }
0x14ab   :  { %996 = vrot.lane.b32.xlu1 %v994_v44, %s2834_s3 }
0x14af   :  { %344 = vrot.lane.b32.xlu1 %v2966_v50, %s2834_s3 }
0x14b3   :  { %568 = vrot.lane.b32.xlu1 %v2996_v31, %s2834_s3  ;;  %v1012_v31 = vld [vmem:[%s3285_s4] sm:$0xff] }
0x14b4   :  { %v2586_v53 = vpack.c.bf16 %v1013_v52, %v1012_v31 }
0x14b6   :  { %2587 = vmatprep.subr.bf16.mxu1 %v2586_v53 }
0x14b7   :  { %896 = vrot.lane.b32.xlu1 %v894_v30, %s2834_s3  ;;  %2589 = vmatpush3.bf16.msra.mxu1 %v2586_v53 }
0x14b8   :  { %2591 = vmatprep.subr.bf16.mxu1 %v2590_v59 }
0x14bb   :  { %2593 = vmatpush3.bf16.msra.mxu1 %v2590_v59 }
0x14bc   :  { %2600 = vmatprep.subr.bf16.mxu1 %v2830_v8 }
0x151d   :  { %v997_v46 = vpop.permute.xlu1 %996 }
0x151e   :  { %v999_v47 = vadd.f32 %v997_v46, %v989_v45 }
0x1520   :  { %2740 = vtanh.f32 %v999_v47 }
0x1521   :  { %v345_v48 = vpop.permute.xlu1 %344 }
0x1522   :  { %348 = vst.msk [vmem:[#allocation2] sm:$0xc] %vm347_vm4, %v345_v48 }
0x1525   :  { %v569_v49 = vpop.permute.xlu1 %568 }
0x1526   :  { %572 = vst.msk [vmem:[#allocation2] sm:$0xc0] %vm571_vm5, %v569_v49 }
0x1529   :  { %v897_v50 = vpop.permute.xlu1 %896 }
0x152a   :  { %v2741_v51 = vpop.eup %2740  ;;  %899 = vst.msk [vmem:[#allocation2 + $0x8] sm:$0x30] %vm459_vm6, %v897_v50 }
0x152b   :  { %1002 = vrot.lane.b32.xlu0 %v2741_v51, %s2833_s30 }
0x152f   :  { %456 = vrot.lane.b32.xlu0 %v2981_v7, %s2834_s3  ;;  %v1017_v7 = vld [vmem:[%s3286_s5 + $0x8] sm:$0xff] }
0x1530   :  { %v3067_v56 = vpack.c.bf16 %v1017_v7, %v1016_v54 }
0x1532   :  { %2596 = vmatpush3.bf16.msra.mxu0 %v3067_v56 }
0x1533   :  { %785 = vrot.lane.b32.xlu0 %v3023_v4, %s2834_s3  ;;  %2597 = vmatprep.subr.bf16.mxu0 %v2830_v8 }
0x1536   :  { %2599 = vmatpush3.bf16.msra.mxu0 %v3079_v60 }
0x1537   :  { %2606 = vmatprep.subr.bf16.mxu0 %v2830_v8 }
0x1539   :  { %2413 = vmatmul.mubr.f32.vlgmr.msra.gmra.mrb[14].mxu0 %v2832_v10 }
0x153a   :  { %2608 = vmatpush3.bf16.msra.mxu0 %v3067_v56  ;;  %2434 = vmatprep.mubr.msk.f32.mxu0 %vm2831_vm1, %v2832_v10 }
0x153b   :  { %2609 = vmatprep.subr.bf16.mxu0 %v2830_v8 }
0x153e   :  { %2611 = vmatpush3.bf16.msra.mxu0 %v3079_v60 }
0x153f   :  { %2618 = vmatprep.subr.bf16.mxu0 %v2830_v8 }
0x159d   :  { %v1003_v61 = vpop.permute.xlu0 %1002 }
0x159e   :  { %v1005_v62 = vmul.f32 %v2739_v42, %v1003_v61 }
0x15a0   :  { %1007 = vrot.lane.b32.xlu0 %v1005_v62, %s2834_s3 }
0x15a1   :  { %v457_v9 = vpop.permute.xlu0 %456 }
0x15a2   :  { %460 = vst.msk [vmem:[#allocation2] sm:$0x30] %vm459_vm6, %v457_v9 }
0x15a5   :  { %v786_v63 = vpop.permute.xlu0 %785 }
0x15a6   :  { %788 = vst.msk [vmem:[#allocation2 + $0x8] sm:$0xc] %vm347_vm4, %v786_v63 }
0x15a9   :  { %v1021_v0 = vld [vmem:[#allocation2] sm:$0xff] }
0x15aa   :  { %2401 = vmatprep.mubr.msk.f32.mxu1 %vm135_vm3, %v1021_v0 }
0x160c   :  { %v1176_v3 = vpop.f32.mrb[14].mxu0 }
0x160d   :  { %v2414_v4 = vpop.f32.mrb[15].mxu0 }
0x1612   :  { %v1008_v1 = vpop.permute.xlu0 %1007 }
0x1613   :  { %1010 = vst.msk [vmem:[#allocation2 + $0x8] sm:$0xc0] %vm571_vm5, %v1008_v1  ;;  %1011 = vst.msk [vmem:[#allocation3 - $0x6] sm:$0xc0] %vm571_vm5, %v1008_v1 }
0x161a   :  { %v1022_v2 = vld [vmem:[#allocation2 + $0x8] sm:$0xff] }
0x161b   :  { %2402 = vmatmul.mubr.msk.f32.vlgmr.msra.gmra.mrb[4].mxu1 %vm135_vm3, %v1022_v2 }
0x161c   :  { %2602 = vmatpush3.bf16.msra.mxu1 %v3067_v56  ;;  %2423 = vmatprep.mubr.msk.f32.mxu1 %vm2831_vm1, %v2832_v10 }
0x161d   :  { %2603 = vmatprep.subr.bf16.mxu1 %v2830_v8 }
0x1620   :  { %2605 = vmatpush3.bf16.msra.mxu1 %v3079_v60 }
0x1621   :  { %2612 = vmatprep.subr.bf16.mxu1 %v2830_v8 }
0x16ee   :  { %v2403_v11 = vpop.f32.mrb[4].mxu1 }
0x16ef   :  { %v3108_v12 = vadd.f32 %v2403_v11, %v2168_v5  ;;  %v1101_v14 = vpop.f32.mrb[5].mxu1 }
0x16f0   :  { %v3110_v16 = vadd.f32 %v2168_v5, %v1101_v14 }
0x16f2   :  { %v1180_v17 = vadd.f32 %v1176_v3, %v3110_v16 }
0x16f4   :  { %2742 = vtanh.f32 %v1180_v17  ;;  %v2171_v19 = vmul.f32 -1.442695, %v1180_v17 }
0x16f6   :  { %2744 = vpow2.f32 %v2171_v19 }
0x16fe   :  { %v2743_v18 = vpop.eup %2742 }
0x16ff   :  { %1190 = vrot.lane.b32.xlu1 %v2743_v18, %s2833_s30 }
0x1700   :  { %v2745_v20 = vpop.eup %2744 }
0x1701   :  { %v1184_v21 = vadd.f32 1.0, %v2745_v20 }
0x1703   :  { %2746 = vrcp.f32 %v1184_v21 }
0x170d   :  { %v2747_v22 = vpop.eup %2746 }
0x170e   :  { %v1188_v25 = vmul.f32 0.0, %v2747_v22 }
0x1771   :  { %v1191_v23 = vpop.permute.xlu1 %1190 }
0x1772   :  { %v1193_v24 = vmul.f32 %v2747_v22, %v1191_v23 }
0x1774   :  { %1195 = vrot.lane.b32.xlu0 %v1193_v24, %s2834_s3 }
0x17e6   :  { %v1196_v26 = vpop.permute.xlu0 %1195 }
0x17e7   :  { %v1198_v27 = vadd.f32 %v1196_v26, %v1188_v25 }
0x17e9   :  { %2748 = vtanh.f32 %v1198_v27  ;;  %v1292_v43 = vrot.slane %v1198_v27, 6 }
0x17f3   :  { %v2749_v28 = vpop.eup %2748 }
0x17f4   :  { %1201 = vrot.lane.b32.xlu1 %v2749_v28, %s2833_s30 }
0x1866   :  { %v1202_v29 = vpop.permute.xlu1 %1201 }
0x1867   :  { %v1204_v15 = vmul.f32 %v2747_v22, %v1202_v29 }
0x1869   :  { %1206 = vrot.lane.b32.xlu0 %v1204_v15, %s2834_s3 }
0x18db   :  { %v1207_v30 = vpop.permute.xlu0 %1206 }
0x18dc   :  { %2424 = vmatmul.mubr.msk.f32.vlgmr.msra.gmra.mrb[6].mxu1 %vm135_vm3, %v1207_v30 }
0x18dd   :  { %2614 = vmatpush3.bf16.msra.mxu1 %v3067_v56  ;;  %2445 = vmatprep.mubr.msk.f32.mxu1 %vm2831_vm1, %v2832_v10 }
0x18de   :  { %2615 = vmatprep.subr.bf16.mxu1 %v2830_v8 }
0x18e1   :  { %2617 = vmatpush3.bf16.msra.mxu1 %v3079_v60 }
0x18e2   :  { %2624 = vmatprep.subr.bf16.mxu1 %v2830_v8 }
0x19af   :  { %v1276_v32 = vpop.f32.mrb[6].mxu1 }
0x19b0   :  { %v1281_v33 = vrot.slane %v1276_v32, 6  ;;  %v2425_v34 = vpop.f32.mrb[7].mxu1 }
0x19b2   :  { %v1283_v35 = vadd.f32 %v1281_v33, %v3110_v16 }
0x19b4   :  { %2750 = vtanh.f32 %v1283_v35  ;;  %v2173_v37 = vmul.f32 -1.442695, %v1283_v35 }
0x19b6   :  { %2752 = vpow2.f32 %v2173_v37 }
0x19be   :  { %v2751_v36 = vpop.eup %2750 }
0x19bf   :  { %1296 = vrot.lane.b32.xlu1 %v2751_v36, %s2833_s30 }
0x19c0   :  { %v2753_v38 = vpop.eup %2752 }
0x19c1   :  { %v1287_v39 = vadd.f32 1.0, %v2753_v38 }
0x19c3   :  { %2754 = vrcp.f32 %v1287_v39 }
0x19cd   :  { %v2755_v40 = vpop.eup %2754 }
0x19ce   :  { %v1294_v44 = vmul.f32 %v2755_v40, %v1292_v43 }
0x1a31   :  { %v1297_v41 = vpop.permute.xlu1 %1296 }
0x1a32   :  { %v1299_v42 = vmul.f32 %v2755_v40, %v1297_v41 }
0x1a34   :  { %1301 = vrot.lane.b32.xlu0 %v1299_v42, %s2834_s3 }
0x1aa6   :  { %v1302_v13 = vpop.permute.xlu0 %1301 }
0x1aa7   :  { %v1304_v45 = vadd.f32 %v1302_v13, %v1294_v44 }
0x1aa9   :  { %2756 = vtanh.f32 %v1304_v45  ;;  %v1399_v61 = vrot.slane %v1304_v45, 6 }
0x1ab3   :  { %v2757_v46 = vpop.eup %2756 }
0x1ab4   :  { %1307 = vrot.lane.b32.xlu1 %v2757_v46, %s2833_s30 }
0x1b26   :  { %v1308_v47 = vpop.permute.xlu1 %1307 }
0x1b27   :  { %v1310_v48 = vmul.f32 %v2755_v40, %v1308_v47 }
0x1b29   :  { %v1312_v49 = vrot.slane %v1310_v48, 2 }
0x1b2b   :  { %1313 = vrot.lane.b32.xlu0 %v1312_v49, %s2834_s3 }
0x1b9d   :  { %v1314_v50 = vpop.permute.xlu0 %1313 }
0x1b9e   :  { %2435 = vmatmul.mubr.msk.f32.vlgmr.msra.gmra.mrb[16].mxu0 %vm135_vm3, %v1314_v50 }
0x1b9f   :  { %2620 = vmatpush3.bf16.msra.mxu0 %v3067_v56  ;;  %2456 = vmatprep.mubr.msk.f32.mxu0 %vm2831_vm1, %v2832_v10 }
0x1ba0   :  { %2621 = vmatprep.subr.bf16.mxu0 %v2830_v8 }
0x1ba3   :  { %2623 = vmatpush3.bf16.msra.mxu0 %v3079_v60 }
0x1ba4   :  { %2630 = vmatprep.subr.bf16.mxu0 %v2830_v8 }
0x1c71   :  { %v1383_v51 = vpop.f32.mrb[16].mxu0 }
0x1c72   :  { %v1388_v31 = vrot.slane %v1383_v51, 4  ;;  %v2436_v52 = vpop.f32.mrb[17].mxu0 }
0x1c74   :  { %v1390_v53 = vadd.f32 %v1388_v31, %v3110_v16 }
0x1c76   :  { %2758 = vtanh.f32 %v1390_v53  ;;  %v2175_v7 = vmul.f32 -1.442695, %v1390_v53 }
0x1c78   :  { %2760 = vpow2.f32 %v2175_v7 }
0x1c80   :  { %v2759_v54 = vpop.eup %2758 }
0x1c81   :  { %1403 = vrot.lane.b32.xlu1 %v2759_v54, %s2833_s30 }
0x1c82   :  { %v2761_v55 = vpop.eup %2760 }
0x1c83   :  { %v1394_v57 = vadd.f32 1.0, %v2761_v55 }
0x1c85   :  { %2762 = vrcp.f32 %v1394_v57 }
0x1c8f   :  { %v2763_v58 = vpop.eup %2762 }
0x1c90   :  { %v1401_v62 = vmul.f32 %v2763_v58, %v1399_v61 }
0x1cf3   :  { %v1404_v6 = vpop.permute.xlu1 %1403 }
0x1cf4   :  { %v1406_v59 = vmul.f32 %v2763_v58, %v1404_v6 }
0x1cf6   :  { %1408 = vrot.lane.b32.xlu0 %v1406_v59, %s2834_s3 }
0x1d68   :  { %v1409_v9 = vpop.permute.xlu0 %1408 }
0x1d69   :  { %v1411_v63 = vadd.f32 %v1409_v9, %v1401_v62 }
0x1d6b   :  { %2764 = vtanh.f32 %v1411_v63  ;;  %v1506_v25 = vrot.slane %v1411_v63, 6 }
0x1d75   :  { %v2765_v0 = vpop.eup %2764 }
0x1d76   :  { %1414 = vrot.lane.b32.xlu1 %v2765_v0, %s2833_s30 }
0x1de8   :  { %v1415_v1 = vpop.permute.xlu1 %1414 }
0x1de9   :  { %v1417_v2 = vmul.f32 %v2763_v58, %v1415_v1 }
0x1deb   :  { %v1419_v3 = vrot.slane %v1417_v2, 4 }
0x1ded   :  { %1420 = vrot.lane.b32.xlu0 %v1419_v3, %s2834_s3 }
0x1e5f   :  { %v1421_v4 = vpop.permute.xlu0 %1420 }
0x1e60   :  { %2446 = vmatmul.mubr.msk.f32.vlgmr.msra.gmra.mrb[8].mxu1 %vm135_vm3, %v1421_v4 }
0x1e61   :  { %2626 = vmatpush3.bf16.msra.mxu1 %v3067_v56  ;;  %2467 = vmatprep.mubr.msk.f32.mxu1 %vm2831_vm1, %v2832_v10 }
0x1e62   :  { %2627 = vmatprep.subr.bf16.mxu1 %v2830_v8 }
0x1e65   :  { %2629 = vmatpush3.bf16.msra.mxu1 %v3079_v60 }
0x1e66   :  { %2636 = vmatprep.subr.bf16.mxu1 %v2830_v8 }
0x1f33   :  { %v1490_v5 = vpop.f32.mrb[8].mxu1 }
0x1f34   :  { %v1495_v11 = vrot.slane %v1490_v5, 2  ;;  %v2447_v14 = vpop.f32.mrb[9].mxu1 }
0x1f36   :  { %v1497_v17 = vadd.f32 %v1495_v11, %v3110_v16 }
0x1f38   :  { %2766 = vtanh.f32 %v1497_v17  ;;  %v2177_v19 = vmul.f32 -1.442695, %v1497_v17 }
0x1f3a   :  { %2768 = vpow2.f32 %v2177_v19 }
0x1f42   :  { %v2767_v18 = vpop.eup %2766 }
0x1f43   :  { %1510 = vrot.lane.b32.xlu1 %v2767_v18, %s2833_s30 }
0x1f44   :  { %v2769_v20 = vpop.eup %2768 }
0x1f45   :  { %v1501_v21 = vadd.f32 1.0, %v2769_v20 }
0x1f47   :  { %2770 = vrcp.f32 %v1501_v21 }
0x1f51   :  { %v2771_v22 = vpop.eup %2770 }
0x1f52   :  { %v1508_v26 = vmul.f32 %v2771_v22, %v1506_v25 }
0x1fb5   :  { %v1511_v23 = vpop.permute.xlu1 %1510 }
0x1fb6   :  { %v1513_v24 = vmul.f32 %v2771_v22, %v1511_v23 }
0x1fb8   :  { %1515 = vrot.lane.b32.xlu0 %v1513_v24, %s2834_s3 }
0x202a   :  { %v1516_v27 = vpop.permute.xlu0 %1515 }
0x202b   :  { %v1518_v28 = vadd.f32 %v1516_v27, %v1508_v26 }
0x202d   :  { %2772 = vtanh.f32 %v1518_v28  ;;  %v1610_v43 = vrot.slane %v1518_v28, 6 }
0x2037   :  { %v2773_v16 = vpop.eup %2772 }
0x2038   :  { %1521 = vrot.lane.b32.xlu1 %v2773_v16, %s2833_s30 }
0x20aa   :  { %v1522_v29 = vpop.permute.xlu1 %1521 }
0x20ab   :  { %v1524_v15 = vmul.f32 %v2771_v22, %v1522_v29 }
0x20ad   :  { %v1526_v30 = vrot.slane %v1524_v15, 6 }
0x20af   :  { %1527 = vrot.lane.b32.xlu0 %v1526_v30, %s2834_s3 }
0x2121   :  { %v1528_v32 = vpop.permute.xlu0 %1527 }
0x2122   :  { %2457 = vmatmul.mubr.msk.f32.vlgmr.msra.gmra.mrb[18].mxu0 %vm135_vm3, %v1528_v32 }
0x2123   :  { %2632 = vmatpush3.bf16.msra.mxu0 %v3067_v56  ;;  %2478 = vmatprep.mubr.msk.f32.mxu0 %vm2831_vm1, %v2832_v10 }
0x2124   :  { %2633 = vmatprep.subr.bf16.mxu0 %v2830_v8 }
0x2127   :  { %2635 = vmatpush3.bf16.msra.mxu0 %v3079_v60 }
0x2128   :  { %2642 = vmatprep.subr.bf16.mxu0 %v2830_v8 }
0x21f5   :  { %v1597_v33 = vpop.f32.mrb[18].mxu0 }
0x21f6   :  { %v1601_v34 = vadd.f32 %v1597_v33, %v3108_v12  ;;  %v2458_v35 = vpop.f32.mrb[19].mxu0 }
0x21f8   :  { %2774 = vtanh.f32 %v1601_v34  ;;  %v2179_v37 = vmul.f32 -1.442695, %v1601_v34 }
0x21fa   :  { %2776 = vpow2.f32 %v2179_v37 }
0x2202   :  { %v2775_v36 = vpop.eup %2774 }
0x2203   :  { %1614 = vrot.lane.b32.xlu1 %v2775_v36, %s2833_s30 }
0x2204   :  { %v2777_v38 = vpop.eup %2776 }
0x2205   :  { %v1605_v39 = vadd.f32 1.0, %v2777_v38 }
0x2207   :  { %2778 = vrcp.f32 %v1605_v39 }
0x2211   :  { %v2779_v40 = vpop.eup %2778 }
0x2212   :  { %v1612_v44 = vmul.f32 %v2779_v40, %v1610_v43 }
0x2275   :  { %v1615_v41 = vpop.permute.xlu1 %1614 }
0x2276   :  { %v1617_v42 = vmul.f32 %v2779_v40, %v1615_v41 }
0x2278   :  { %1619 = vrot.lane.b32.xlu0 %v1617_v42, %s2834_s3 }
0x22ea   :  { %v1620_v13 = vpop.permute.xlu0 %1619 }
0x22eb   :  { %v1622_v45 = vadd.f32 %v1620_v13, %v1612_v44  ;;  %v1956_v44 = vld [vmem:[%s3288_s7] sm:$0xff]  ;;  %v1957_v13 = vld [vmem:[%s3288_s7 + $0x8] sm:$0xff] }
0x22ed   :  { %2780 = vtanh.f32 %v1622_v45 }
0x22f7   :  { %v2781_v46 = vpop.eup %2780 }
0x22f8   :  { %1625 = vrot.lane.b32.xlu1 %v2781_v46, %s2833_s30  ;;  %v2643_v46 = vpack.c.bf16 %v1957_v13, %v1956_v44 }
0x236a   :  { %v1626_v47 = vpop.permute.xlu1 %1625 }
0x236b   :  { %v1628_v48 = vmul.f32 %v2779_v40, %v1626_v47  ;;  %v1959_v47 = vld [vmem:[%s3288_s7 + $0x18] sm:$0xff] }
0x236d   :  { %1630 = vrot.lane.b32.xlu0 %v1628_v48, %s2834_s3 }
0x23df   :  { %v1631_v49 = vpop.permute.xlu0 %1630 }
0x23e0   :  { %2468 = vmatmul.mubr.msk.f32.vlgmr.msra.gmra.mrb[10].mxu1 %vm135_vm3, %v1631_v49 }
0x23e1   :  { %2638 = vmatpush3.bf16.msra.mxu1 %v3067_v56  ;;  %2489 = vmatprep.mubr.msk.f32.mxu1 %vm2831_vm1, %v2832_v10 }
0x23e2   :  { %2639 = vmatprep.subr.bf16.mxu1 %v2830_v8 }
0x23e5   :  { %2641 = vmatpush3.bf16.msra.mxu1 %v3079_v60  ;;  %v1716_v60 = vrot.slane %v1622_v45, 6  ;;  %v1958_v45 = vld [vmem:[%s3288_s7 + $0x10] sm:$0xff] }
0x23e6   :  { %2648 = vmatprep.subr.bf16.mxu1 %v2830_v8  ;;  %v2646_v48 = vpack.c.bf16 %v1959_v47, %v1958_v45 }
0x24b3   :  { %v1700_v50 = vpop.f32.mrb[10].mxu1 }
0x24b4   :  { %v1705_v51 = vrot.slane %v1700_v50, 6  ;;  %v2469_v31 = vpop.f32.mrb[11].mxu1  ;;  %v2041_v50 = vld [vmem:[%s3290_s9] sm:$0xff] }
0x24b5   :  { %v2043_v31 = vld [vmem:[%s3290_s9 + $0x10] sm:$0xff] }
0x24b6   :  { %v1707_v52 = vadd.f32 %v1705_v51, %v3108_v12  ;;  %v2042_v51 = vld [vmem:[%s3290_s9 + $0x8] sm:$0xff] }
0x24b8   :  { %2782 = vtanh.f32 %v1707_v52  ;;  %v2181_v54 = vmul.f32 -1.442695, %v1707_v52 }
0x24ba   :  { %2784 = vpow2.f32 %v2181_v54  ;;  %v2044_v54 = vld [vmem:[%s3290_s9 + $0x18] sm:$0xff] }
0x24c2   :  { %v2783_v53 = vpop.eup %2782 }
0x24c3   :  { %1720 = vrot.lane.b32.xlu1 %v2783_v53, %s2833_s30  ;;  %v2649_v53 = vpack.c.bf16 %v2042_v51, %v2041_v50 }
0x24c4   :  { %v2785_v56 = vpop.eup %2784 }
0x24c5   :  { %v1711_v7 = vadd.f32 1.0, %v2785_v56  ;;  %v2652_v56 = vpack.c.bf16 %v2044_v54, %v2043_v31 }
0x24c7   :  { %2786 = vrcp.f32 %v1711_v7  ;;  %v2045_v7 = vld [vmem:[%s3290_s9 + $0x20] sm:$0xff] }
0x24d1   :  { %v2787_v55 = vpop.eup %2786 }
0x24d2   :  { %v1718_v6 = vmul.f32 %v2787_v55, %v1716_v60  ;;  %v2048_v60 = vld [vmem:[%s3290_s9 + $0x38] sm:$0xff] }
0x2535   :  { %v1721_v57 = vpop.permute.xlu1 %1720 }
0x2536   :  { %v1723_v58 = vmul.f32 %v2787_v55, %v1721_v57 }
0x2538   :  { %1725 = vrot.lane.b32.xlu0 %v1723_v58, %s2834_s3  ;;  %v2047_v58 = vld [vmem:[%s3290_s9 + $0x30] sm:$0xff] }
0x25aa   :  { %v1726_v59 = vpop.permute.xlu0 %1725 }
0x25ab   :  { %v1728_v61 = vadd.f32 %v1726_v59, %v1718_v6  ;;  %v2658_v6 = vpack.c.bf16 %v2048_v60, %v2047_v58  ;;  %v2049_v59 = vld [vmem:[%s3290_s9 + $0x40] sm:$0xff] }
0x25ad   :  { %2788 = vtanh.f32 %v1728_v61  ;;  %v1823_v22 = vrot.slane %v1728_v61, 6  ;;  %v2050_v61 = vld [vmem:[%s3290_s9 + $0x48] sm:$0xff] }
0x25b7   :  { %v2789_v62 = vpop.eup %2788 }
0x25b8   :  { %1731 = vrot.lane.b32.xlu1 %v2789_v62, %s2833_s30  ;;  %v2661_v62 = vpack.c.bf16 %v2050_v61, %v2049_v59 }
0x262a   :  { %v1732_v9 = vpop.permute.xlu1 %1731 }
0x262b   :  { %v1734_v63 = vmul.f32 %v2787_v55, %v1732_v9  ;;  %v2046_v55 = vld [vmem:[%s3290_s9 + $0x28] sm:$0xff]  ;;  %v2051_v9 = vld [vmem:[%s3290_s9 + $0x50] sm:$0xff] }
0x262c   :  { %v2655_v57 = vpack.c.bf16 %v2046_v55, %v2045_v7 }
0x262d   :  { %v1736_v0 = vrot.slane %v1734_v63, 2  ;;  %v2052_v63 = vld [vmem:[%s3290_s9 + $0x58] sm:$0xff] }
0x262f   :  { %1737 = vrot.lane.b32.xlu0 %v1736_v0, %s2834_s3  ;;  %v2664_v0 = vpack.c.bf16 %v2052_v63, %v2051_v9 }
0x26a1   :  { %v1738_v1 = vpop.permute.xlu0 %1737 }
0x26a2   :  { %2479 = vmatmul.mubr.msk.f32.vlgmr.msra.gmra.mrb[20].mxu0 %vm135_vm3, %v1738_v1  ;;  %v2053_v1 = vld [vmem:[%s3290_s9 + $0x60] sm:$0xff] }
0x26a3   :  { %2500 = vmatprep.mubr.msk.f32.mxu0 %vm2831_vm1, %v2832_v10  ;;  %2644 = vmatpush3.bf16.msra.mxu0 %v2643_v46 }
0x26a4   :  { %2645 = vmatprep.subr.bf16.mxu0 %v2830_v8 }
0x26a7   :  { %2647 = vmatpush3.bf16.msra.mxu0 %v2646_v48 }
0x2775   :  { %v1807_v2 = vpop.f32.mrb[20].mxu0 }
0x2776   :  { %v1812_v3 = vrot.slane %v1807_v2, 4  ;;  %v2480_v4 = vpop.f32.mrb[21].mxu0  ;;  %v2054_v2 = vld [vmem:[%s3290_s9 + $0x68] sm:$0xff] }
0x2778   :  { %v1814_v5 = vadd.f32 %v1812_v3, %v3108_v12  ;;  %v2667_v3 = vpack.c.bf16 %v2054_v2, %v2053_v1 }
0x277a   :  { %2790 = vtanh.f32 %v1814_v5  ;;  %v2183_v14 = vmul.f32 -1.442695, %v1814_v5 }
0x277c   :  { %2792 = vpow2.f32 %v2183_v14  ;;  %v2055_v14 = vld [vmem:[%s3290_s9 + $0x70] sm:$0xff] }
0x2784   :  { %v2791_v11 = vpop.eup %2790 }
0x2785   :  { %1827 = vrot.lane.b32.xlu1 %v2791_v11, %s2833_s30 }
0x2786   :  { %v2793_v17 = vpop.eup %2792 }
0x2787   :  { %v1818_v18 = vadd.f32 1.0, %v2793_v17  ;;  %v2056_v17 = vld [vmem:[%s3290_s9 + $0x78] sm:$0xff]  ;;  %s2806_s9 = scalar_lea.vmem %s2143_s22, 64 }
0x2788   :  { %p2807_p0 = scmp.ne.s32.totalorder %s2143_s22, %s2806_s9  ;;  %p2812_p2 = scmp.lt.s32.totalorder %s2806_s9, %s2806_s9 }
0x2789   :  { %2794 = vrcp.f32 %v1818_v18  ;;  %v2670_v18 = vpack.c.bf16 %v2056_v17, %v2055_v14 }
0x278a   :  { %p2813_p3 = por %p2812_p2, %p2811_p1 }
0x278c   :  { %p2814_p4 = pnand %p2813_p3, %p2807_p0 }
0x2793   :  { %v2795_v19 = vpop.eup %2794 }
0x2794   :  { %v1825_v23 = vmul.f32 %v2795_v19, %v1823_v22 }
0x27f7   :  { %v1828_v20 = vpop.permute.xlu1 %1827 }
0x27f8   :  { %v1830_v21 = vmul.f32 %v2795_v19, %v1828_v20 }
0x27fa   :  { %1832 = vrot.lane.b32.xlu0 %v1830_v21, %s2834_s3 }
0x286c   :  { %v1833_v24 = vpop.permute.xlu0 %1832 }
0x286d   :  { %v1835_v25 = vadd.f32 %v1833_v24, %v1825_v23  ;;  %v2188_v23 = vld [vmem:[%s3291_s10] ss:$0 sm:$0xff] }
0x286f   :  { %2796 = vtanh.f32 %v1835_v25 }
0x2879   :  { %v2797_v26 = vpop.eup %2796 }
0x287a   :  { %1838 = vrot.lane.b32.xlu1 %v2797_v26, %s2833_s30 }
0x28ec   :  { %v1839_v27 = vpop.permute.xlu1 %1838 }
0x28ed   :  { %v1841_v28 = vmul.f32 %v2795_v19, %v1839_v27 }
0x28ef   :  { %v1843_v16 = vrot.slane %v1841_v28, 4 }
0x28f1   :  { %1844 = vrot.lane.b32.xlu0 %v1843_v16, %s2834_s3 }
0x2963   :  { %v1845_v29 = vpop.permute.xlu0 %1844 }
0x2964   :  { %2490 = vmatmul.mubr.msk.f32.vlgmr.msra.gmra.mrb[12].mxu1 %vm135_vm3, %v1845_v29 }
0x2965   :  { %2535 = vmatprep.mubr.msk.f32.mxu1 %vm2831_vm1, %v2832_v10  ;;  %v1930_v10 = vrot.slane %v1835_v25, 6  ;;  %2650 = vmatpush3.bf16.msra.mxu1 %v2649_v53 }
0x2966   :  { %2651 = vmatprep.subr.bf16.mxu1 %v2830_v8 }
0x2969   :  { %2653 = vmatpush3.bf16.msra.mxu1 %v2652_v56 }
0x296a   :  { %2654 = vmatprep.subr.bf16.mxu1 %v2830_v8 }
0x296d   :  { %2656 = vmatpush3.bf16.msra.mxu1 %v2655_v57 }
0x296e   :  { %2657 = vmatprep.subr.bf16.mxu1 %v2830_v8 }
0x2971   :  { %2659 = vmatpush3.bf16.msra.mxu1 %v2658_v6 }
0x2972   :  { %2660 = vmatprep.subr.bf16.mxu1 %v2830_v8 }
0x2975   :  { %2662 = vmatpush3.bf16.msra.mxu1 %v2661_v62 }
0x2976   :  { %2663 = vmatprep.subr.bf16.mxu1 %v2830_v8 }
0x2979   :  { %2665 = vmatpush3.bf16.msra.mxu1 %v2664_v0 }
0x297a   :  { %2666 = vmatprep.subr.bf16.mxu1 %v2830_v8 }
0x297d   :  { %2668 = vmatpush3.bf16.msra.mxu1 %v2667_v3 }
0x297e   :  { %2669 = vmatprep.subr.bf16.mxu1 %v2830_v8  ;;  %v2186_v8 = vld [vmem:[%s3289_s8] ss:$0 sm:$0xff] }
0x2981   :  { %2671 = vmatpush3.bf16.msra.mxu1 %v2670_v18 }
0x2a37   :  { %v1914_v15 = vpop.f32.mrb[12].mxu1 }
0x2a38   :  { %v1919_v30 = vrot.slane %v1914_v15, 2  ;;  %v2491_v32 = vpop.f32.mrb[13].mxu1 }
0x2a3a   :  { %v1921_v33 = vadd.f32 %v1919_v30, %v3108_v12 }
0x2a3c   :  { %2798 = vtanh.f32 %v1921_v33  ;;  %v2185_v35 = vmul.f32 -1.442695, %v1921_v33 }
0x2a3e   :  { %2800 = vpow2.f32 %v2185_v35 }
0x2a46   :  { %v2799_v34 = vpop.eup %2798 }
0x2a47   :  { %1934 = vrot.lane.b32.xlu1 %v2799_v34, %s2833_s30 }
0x2a48   :  { %v2801_v36 = vpop.eup %2800 }
0x2a49   :  { %v1925_v37 = vadd.f32 1.0, %v2801_v36 }
0x2a4b   :  { %2802 = vrcp.f32 %v1925_v37 }
0x2a55   :  { %v2803_v38 = vpop.eup %2802 }
0x2a56   :  { %v1932_v41 = vmul.f32 %v2803_v38, %v1930_v10 }
0x2ab9   :  { %v1935_v39 = vpop.permute.xlu1 %1934 }
0x2aba   :  { %v1937_v40 = vmul.f32 %v2803_v38, %v1935_v39 }
0x2abc   :  { %1939 = vrot.lane.b32.xlu0 %v1937_v40, %s2834_s3 }
0x2b2e   :  { %v1940_v42 = vpop.permute.xlu0 %1939 }
0x2b2f   :  { %v1942_v43 = vadd.f32 %v1940_v42, %v1932_v41 }
0x2b31   :  { %2804 = vtanh.f32 %v1942_v43 }
0x2b3b   :  { %v2805_v12 = vpop.eup %2804 }
0x2b3c   :  { %1945 = vrot.lane.b32.xlu1 %v2805_v12, %s2833_s30 }
0x2bae   :  { %v1946_v49 = vpop.permute.xlu1 %1945 }
0x2baf   :  { %v1948_v52 = vmul.f32 %v2803_v38, %v1946_v49 }
0x2bb1   :  { %1950 = vrot.lane.b32.xlu0 %v1948_v52, %s2834_s3 }
0x2c23   :  { %v1951_v4 = vpop.permute.xlu0 %1950 }
0x2c24   :  { %1953 = vst.msk [vmem:[#allocation3 - $0x4] sm:$0xc0] %vm571_vm5, %v1951_v4 }
0x2c2b   :  { %v1954_v5 = vld [vmem:[#allocation3] sm:$0xf] }
0x2c2c   :  { %v1955_v11 = vmax.f32 %v1954_v5, 0.0 }
0x2c2e   :  { %2501 = vmatmul.mubr.msk.f32.vlgmr.msra.gmra.mrb[22].mxu0 %vm135_vm3, %v1955_v11 }
0x2d01   :  { %v2036_v19 = vpop.f32.mrb[22].mxu0 }
0x2d02   :  { %v2037_v20 = vadd.f32 %v2186_v8, %v2036_v19  ;;  %v2502_v21 = vpop.f32.mrb[23].mxu0 }
0x2d04   :  { %v2040_v22 = vmax.f32 %v2037_v20, 0.0 }
0x2d06   :  { %2536 = vmatmul.mubr.f32.vlgmr.msra.gmra.mrb[14].mxu1 %v2040_v22 }
0x2dd9   :  { %v2130_v24 = vpop.f32.mrb[14].mxu1 }
0x2dda   :  { %v2131_v25 = vadd.f32 %v2188_v23, %v2130_v24  ;;  %v2537_v26 = vpop.f32.mrb[15].mxu1 }
0x2ddc   :  { %2135 = vst.msk [vmem:[#allocation4] sm:$0xf] %vm2134_vm7, %v2131_v25 }
0x2ddd   :  { %2817 = shalt.err (!%p2814_p4)
}
0x2dde   :  { %s2818_s24 = scalar_lea.hbm %s3292_s11, 64 }
0x2ddf   :  { %p2819_p5 = scmp.ne.s32.totalorder %s3292_s11, %s2818_s24  ;;  %p2822_p6 = scmp.lt.u32.totalorder %s2818_s24, %s3292_s11 }
0x2de1   :  { %p2824_p7 = pnand %p2822_p6, %p2819_p5 }
0x2de3   :  { %2827 = shalt.err (!%p2824_p7)
}
0x2de4   :  { %2145 = dma.vmem_to_hbm [thread:$0]  %s2143_s22, 64, %s3292_s11, [#allocation5]  }
0x2de5   :  { %2828 = dma.done.wait [#allocation5], 64  }
0x2de6   :  { %2829 = vsyncadd [#allocation5], 4294967232 }
0x2de7   :  { %2149 = vsyncpa [#allocation5], 1 }

</bundles_post_ra>
